<compile_context>
chip_gen: v6e
topology: v6e:2x2x1
jax: 0.10.0
libtpu: 0.0.40
codegen_flags: <defaults>
</compile_context>

<pallas_src>
import functools

import jax
import jax.numpy as jnp
import numpy as np
from jax.experimental import pallas as pl
from jax.experimental.pallas import tpu as pltpu


# ----------------------------------------------------------------------------
# Fused kernel: masked MLP (MADE) + Bernoulli log-prob + log-space chain.
#
# Transposed layout (batch on lanes):
#   x_ref      : (I, Bt)  f32                  input tile
#   w_refs[l]  : (out_l, in_l) bf16            pre-masked MADE weights
#   colp_ref   : (sum(out_l) + I*A*A, 1) f32   [b_0; ...; b_{L-1}; log p(alpha)]
#   theta_ref  : (I*A*A, Bt) f32               net output (transposed theta)
#   logpx_ref  : (A, Bt)     f32               log p(x) (transposed)
# ----------------------------------------------------------------------------
def make_dart_kernel(I, A, out_sizes):
    AA = A * A
    L = len(out_sizes)
    offs = [0]
    for o in out_sizes:
        offs.append(offs[-1] + o)
    lpa_off = offs[-1]  # start of the log p(alpha) rows inside colp

    def kernel(*refs):
        x_ref = refs[0]
        w_refs = refs[1:1 + L]
        colp_ref = refs[1 + L]
        theta_ref = refs[2 + L]
        logpx_ref = refs[3 + L]

        x = x_ref[...]          # (I, Bt) f32
        colp = colp_ref[...]    # (P, 1)  f32

        # ---- masked MLP:  h <- relu(W h + b); bf16 on the MXU, f32 accumulate
        h = x
        for li in range(L):
            w = w_refs[li][...]                                # (out, in) bf16
            b = colp[offs[li]:offs[li] + out_sizes[li], :]     # (out, 1)  f32
            h = jnp.dot(w, h.astype(jnp.bfloat16),
                        preferred_element_type=jnp.float32) + b
            if li < L - 1:                                     # ReLU on hidden layers only
                h = jnp.maximum(h, 0.0)
        theta_ref[...] = h                                     # (I*AA, Bt) lane-dense store

        # ---- Bernoulli log-prob + fast_logexpmv chain (f32, batch on lanes) ----
        def lp_block(i):
            # log Bernoulli(logits=l).prob(x_i) = x_i*l - softplus(l) for dim i (AA rows)
            blk = h[i * AA:(i + 1) * AA, :]                    # (AA, Bt)
            sp = jnp.maximum(blk, 0.0) + jnp.log1p(jnp.exp(-jnp.abs(blk)))
            return x[i:i + 1, :] * blk - sp                    # x row broadcast over sublanes

        def joint_block(i):
            # + log p(alpha_i = c); (AA, 1) column broadcast over the batch lanes
            return lp_block(i) + colp[lpa_off + i * AA: lpa_off + (i + 1) * AA, :]

        def row(blk, r, c):
            j = r * A + c
            return blk[j:j + 1, :]                             # (1, Bt) full-lane row

        def lse(vals):                                         # stable logsumexp of rows
            mx = vals[0]
            for v in vals[1:]:
                mx = jnp.maximum(mx, v)
            s = jnp.exp(vals[0] - mx)
            for v in vals[1:]:
                s = s + jnp.exp(v - mx)
            return mx + jnp.log(s)

        # left reduce with fast_logexpmv over the I-1 "joint" matrices.
        # I and A are small & static here, so the unrolled Python loop is fine.
        # TODO(synk): for MADE-scale I (e.g. 784), move the chain into a
        # lax.fori_loop over a VMEM scratch copy of h to bound trace size.
        J0 = joint_block(0)
        R = [[row(J0, m, n) for n in range(A)] for m in range(A)]
        for i in range(1, I - 1):
            Ji = joint_block(i)
            R = [[lse([R[m][k] + row(Ji, k, n) for k in range(A)])
                  for n in range(A)] for m in range(A)]

        # final multiply by p(x_{N-1} | alpha_{N-1}) = lp[:, -1, :, 0]
        lp_last = lp_block(I - 1)
        for m in range(A):
            logpx_ref[m:m + 1, :] = lse(
                [R[m][k] + row(lp_last, k, 0) for k in range(A)])

    return kernel


# ----------------------------------------------------------------------------
# Parameter construction (masks, init) -- plain JAX / numpy glue.
# ----------------------------------------------------------------------------
def create_masks(input_size, hidden_size, n_hidden):
    degrees = [np.arange(input_size)]
    for _ in range(n_hidden + 1):
        degrees.append(np.arange(hidden_size) % (input_size - 1))
    degrees.append(np.arange(input_size) % input_size - 1)    # (arange % I) - 1, as in torch
    masks = []
    for d0, d1 in zip(degrees[:-1], degrees[1:]):
        masks.append((d1[:, None] >= d0[None, :]).astype(np.float32))
    return masks


def init_dart_params(key, input_size, hidden_size, n_hidden, alpha_dim):
    masks = create_masks(input_size, hidden_size, n_hidden)
    ovpd = 1 * alpha_dim ** 2                       # 'binary' -> 1 param per dim
    out_features = input_size * ovpd
    # masks[-1].repeat(1, ovpd).view(-1, hidden_size): each input row repeated ovpd times
    out_mask = np.repeat(masks[-1], ovpd, axis=0)

    layer_defs = [(hidden_size, input_size, masks[0])]
    for i in range(n_hidden - 1):
        layer_defs.append((hidden_size, hidden_size, masks[i + 1]))
    layer_defs.append((out_features, hidden_size, out_mask))

    keys = jax.random.split(key, 2 * len(layer_defs) + 1)
    weights, biases = [], []
    for li, (out_f, in_f, mask) in enumerate(layer_defs):
        bound = 1.0 / np.sqrt(in_f)
        W = jax.random.uniform(keys[2 * li], (out_f, in_f), jnp.float32, -bound, bound)
        b = jax.random.uniform(keys[2 * li + 1], (out_f,), jnp.float32, -bound, bound)
        Wm = (W * jnp.asarray(mask)).astype(jnp.bfloat16)   # mask, then bf16 for the MXU
        weights.append(Wm)                                   # kept in (out, in) orientation
        biases.append(b)

    u_log_p_alpha = jax.random.normal(
        keys[-1], (1, input_size - 1, 1, alpha_dim), jnp.float32)
    return weights, biases, u_log_p_alpha


# ----------------------------------------------------------------------------
# Forward pass: one fused pallas_call over batch tiles.
# ----------------------------------------------------------------------------
def dart_forward(x, weights, biases, u_log_p_alpha, input_size, alpha_dim, block_b=128):
    B = x.shape[0]
    I, A = input_size, alpha_dim
    AA = A * A
    O = I * AA
    out_sizes = [w.shape[0] for w in weights]

    # log p(alpha) = log_softmax(u, -1); laid out as a (I*AA, 1) column so that
    # row i*AA + r*A + c holds log p(alpha_i = c) (zeros for the last, unused block).
    u = u_log_p_alpha
    mx = jnp.max(u, axis=-1, keepdims=True)
    lpa = u - (mx + jnp.log(jnp.sum(jnp.exp(u - mx), axis=-1, keepdims=True)))
    lpa = lpa[0, :, 0, :]                                        # (I-1, A)
    lpa_rows = jnp.broadcast_to(lpa[:, None, :], (I - 1, A, A)).reshape(I - 1, AA)
    lpa_rows = jnp.concatenate([lpa_rows, jnp.zeros((1, AA), jnp.float32)], axis=0)
    lpa_col = lpa_rows.reshape(O, 1)

    # single column operand: [b_0; ...; b_{L-1}; log p(alpha)]
    colp = jnp.concatenate([b.reshape(-1, 1) for b in biases] + [lpa_col], axis=0)

    # batch on lanes: transpose the activations once in the wrapper (layout plumbing)
    x_t = x.T                                                    # (I, B)

    bt = block_b if (B % block_b == 0) else B                    # batch tile (lane dim)
    grid = (B // bt,)

    in_specs = [pl.BlockSpec((I, bt), lambda i: (0, i))]
    args = [x_t]
    for w in weights:                                            # VMEM-resident weights
        args.append(w)
        in_specs.append(pl.BlockSpec(w.shape, lambda i: (0, 0)))
    args.append(colp)
    in_specs.append(pl.BlockSpec(colp.shape, lambda i: (0, 0)))

    theta_t, logpx_t = pl.pallas_call(
        make_dart_kernel(I, A, out_sizes),
        out_shape=(jax.ShapeDtypeStruct((O, B), jnp.float32),
                   jax.ShapeDtypeStruct((A, B), jnp.float32)),
        grid=grid,
        in_specs=in_specs,
        out_specs=(pl.BlockSpec((O, bt), lambda i: (0, i)),
                   pl.BlockSpec((A, bt), lambda i: (0, i))),
        compiler_params=pltpu.CompilerParams(
            dimension_semantics=("parallel",),          # shard batch tiles across TCs
            vmem_limit_bytes=32 * 1024 * 1024),
    )(*args)

    theta = theta_t.T.reshape(B, I, 1, A, A)
    log_px = logpx_t.T.reshape(B, A, 1)
    return log_px, theta


# ----------------------------------------------------------------------------
# Pure-JAX reference (verification only; same bf16-matmul / f32-acc numerics).
# ----------------------------------------------------------------------------
def dart_reference(x, weights, biases, u_log_p_alpha, input_size, alpha_dim):
    B = x.shape[0]
    I, A = input_size, alpha_dim
    h = x
    for li, (w, b) in enumerate(zip(weights, biases)):
        h = jnp.dot(h.astype(jnp.bfloat16), w.T, preferred_element_type=jnp.float32) + b
        if li < len(weights) - 1:
            h = jnp.maximum(h, 0.0)
    theta = h.reshape(B, I, 1, A, A)
    logits = theta[:, :, 0]                                      # (B, I, A, A)
    softplus = jnp.maximum(logits, 0.0) + jnp.log1p(jnp.exp(-jnp.abs(logits)))
    lp = x[:, :, None, None] * logits - softplus

    u = u_log_p_alpha
    mx = jnp.max(u, axis=-1, keepdims=True)
    lpa = u - (mx + jnp.log(jnp.sum(jnp.exp(u - mx), axis=-1, keepdims=True)))
    joint = lp[:, :-1] + lpa                                     # (B, I-1, A, A)

    def logmm(Aa, Bb):  # log(exp(Aa) @ exp(Bb)), batched
        T = Aa[:, :, :, None] + Bb[:, None, :, :]
        m = jnp.max(T, axis=2, keepdims=True)
        return jnp.squeeze(m, 2) + jnp.log(jnp.sum(jnp.exp(T - m), axis=2))

    R = joint[:, 0]
    for i in range(1, I - 1):
        R = logmm(R, joint[:, i])
    log_px = logmm(R, lp[:, -1, :, 0:1])
    return log_px, theta


if __name__ == "__main__":
    # Small config consistent with the module: input_size=8, hidden_size=32,
    # n_hidden=2, alpha_dim=2, distribution='binary'; batch=256 so the batch
    # grid actually has two 128-lane tiles.
    B, I, H, NH, A = 256, 8, 32, 2, 2

    key = jax.random.PRNGKey(0)
    k_param, k_x = jax.random.split(key)
    weights, biases, u_lpa = init_dart_params(k_param, I, H, NH, A)
    x = (jax.random.uniform(k_x, (B, I), jnp.float32) > 0.5).astype(jnp.float32)

    fwd = jax.jit(functools.partial(dart_forward, input_size=I, alpha_dim=A))
    log_px, theta = fwd(x, weights, biases, u_lpa)
    log_px = jax.block_until_ready(log_px)
    theta = jax.block_until_ready(theta)

    log_px_ref, theta_ref = dart_reference(x, weights, biases, u_lpa, I, A)
    assert theta.shape == (B, I, 1, A, A)
    assert log_px.shape == (B, A, 1)
    assert jnp.allclose(theta, theta_ref, atol=2e-3, rtol=2e-3)
    assert jnp.allclose(log_px, log_px_ref, atol=2e-3, rtol=2e-3)
    assert bool(jnp.all(jnp.isfinite(log_px)))

    print("KERNEL_OK")
</pallas_src>

<mosaic_0001>
module attributes {stable_mosaic.version = 11 : i64} {
  func.func @kernel(%arg0: i32, %arg1: memref<8x128xf32, #tpu.memory_space<vmem>>, %arg2: memref<32x8xbf16, #tpu.memory_space<vmem>>, %arg3: memref<32x32xbf16, #tpu.memory_space<vmem>>, %arg4: memref<32x32xbf16, #tpu.memory_space<vmem>>, %arg5: memref<128x1xf32, #tpu.memory_space<vmem>>, %arg6: memref<32x128xf32, #tpu.memory_space<vmem>>, %arg7: memref<2x128xf32, #tpu.memory_space<vmem>>) attributes {dimension_semantics = [#tpu.dimension_semantics<parallel>], iteration_bounds = array<i64: 2>, scalar_prefetch = 0 : i64, scratch_operands = 0 : i64, tpu.core_type = #tpu.core_type<tc>, window_params = [{transform_indices = @transform_0, window_bounds = array<i64: 8, 128>}, {pipeline_mode = #tpu.pipeline_mode<synchronous>, transform_indices = @transform_1, window_bounds = array<i64: 32, 8>}, {pipeline_mode = #tpu.pipeline_mode<synchronous>, transform_indices = @transform_2, window_bounds = array<i64: 32, 32>}, {pipeline_mode = #tpu.pipeline_mode<synchronous>, transform_indices = @transform_3, window_bounds = array<i64: 32, 32>}, {pipeline_mode = #tpu.pipeline_mode<synchronous>, transform_indices = @transform_4, window_bounds = array<i64: 128, 1>}, {transform_indices = @transform_5, window_bounds = array<i64: 32, 128>}, {transform_indices = @transform_6, window_bounds = array<i64: 2, 128>}]} {
    %c0 = arith.constant 0 : index
    %c0_0 = arith.constant 0 : index
    %0 = vector.load %arg1[%c0, %c0_0] : memref<8x128xf32, #tpu.memory_space<vmem>>, vector<8x128xf32>
    %c0_1 = arith.constant 0 : index
    %c0_2 = arith.constant 0 : index
    %1 = vector.load %arg5[%c0_1, %c0_2] : memref<128x1xf32, #tpu.memory_space<vmem>>, vector<128x1xf32>
    %c0_3 = arith.constant 0 : index
    %c0_4 = arith.constant 0 : index
    %2 = vector.load %arg2[%c0_3, %c0_4] : memref<32x8xbf16, #tpu.memory_space<vmem>>, vector<32x8xbf16>
    %3 = vector.extract_strided_slice %1 {offsets = [0, 0], sizes = [32, 1], strides = [1, 1]} : vector<128x1xf32> to vector<32x1xf32>
    %4 = arith.truncf %0 : vector<8x128xf32> to vector<8x128xbf16>
    %cst = arith.constant dense<0.000000e+00> : vector<32x128xf32>
    %5 = tpu.matmul %2, %4, %cst {dimension_numbers = #tpu.dot_dimension_numbers<[1], [0], [0], [1], [0, 0, 1, 1], [], []>} : vector<32x8xbf16>, vector<8x128xbf16>, vector<32x128xf32> -> vector<32x128xf32>
    %6 = vector.broadcast %3 : vector<32x1xf32> to vector<32x128xf32>
    %7 = arith.addf %5, %6 : vector<32x128xf32>
    %cst_5 = arith.constant 0.000000e+00 : f32
    %8 = vector.broadcast %cst_5 : f32 to vector<32x128xf32>
    %9 = arith.maximumf %7, %8 : vector<32x128xf32>
    %c0_6 = arith.constant 0 : index
    %c0_7 = arith.constant 0 : index
    %10 = vector.load %arg3[%c0_6, %c0_7] : memref<32x32xbf16, #tpu.memory_space<vmem>>, vector<32x32xbf16>
    %11 = vector.extract_strided_slice %1 {offsets = [32, 0], sizes = [32, 1], strides = [1, 1]} : vector<128x1xf32> to vector<32x1xf32>
    %12 = arith.truncf %9 : vector<32x128xf32> to vector<32x128xbf16>
    %cst_8 = arith.constant dense<0.000000e+00> : vector<32x128xf32>
    %13 = tpu.matmul %10, %12, %cst_8 {dimension_numbers = #tpu.dot_dimension_numbers<[1], [0], [0], [1], [0, 0, 1, 1], [], []>} : vector<32x32xbf16>, vector<32x128xbf16>, vector<32x128xf32> -> vector<32x128xf32>
    %14 = vector.broadcast %11 : vector<32x1xf32> to vector<32x128xf32>
    %15 = arith.addf %13, %14 : vector<32x128xf32>
    %cst_9 = arith.constant 0.000000e+00 : f32
    %16 = vector.broadcast %cst_9 : f32 to vector<32x128xf32>
    %17 = arith.maximumf %15, %16 : vector<32x128xf32>
    %c0_10 = arith.constant 0 : index
    %c0_11 = arith.constant 0 : index
    %18 = vector.load %arg4[%c0_10, %c0_11] : memref<32x32xbf16, #tpu.memory_space<vmem>>, vector<32x32xbf16>
    %19 = vector.extract_strided_slice %1 {offsets = [64, 0], sizes = [32, 1], strides = [1, 1]} : vector<128x1xf32> to vector<32x1xf32>
    %20 = arith.truncf %17 : vector<32x128xf32> to vector<32x128xbf16>
    %cst_12 = arith.constant dense<0.000000e+00> : vector<32x128xf32>
    %21 = tpu.matmul %18, %20, %cst_12 {dimension_numbers = #tpu.dot_dimension_numbers<[1], [0], [0], [1], [0, 0, 1, 1], [], []>} : vector<32x32xbf16>, vector<32x128xbf16>, vector<32x128xf32> -> vector<32x128xf32>
    %22 = vector.broadcast %19 : vector<32x1xf32> to vector<32x128xf32>
    %23 = arith.addf %21, %22 : vector<32x128xf32>
    %c0_13 = arith.constant 0 : index
    %c0_14 = arith.constant 0 : index
    %24 = vector.load %arg6[%c0_13, %c0_14] : memref<32x128xf32, #tpu.memory_space<vmem>>, vector<32x128xf32>
    tpu.vector_store %arg6[%c0_13, %c0_14], %23 {strides = array<i32>} : memref<32x128xf32, #tpu.memory_space<vmem>>, vector<32x128xf32>,
    %25 = vector.extract_strided_slice %23 {offsets = [0, 0], sizes = [4, 128], strides = [1, 1]} : vector<32x128xf32> to vector<4x128xf32>
    %cst_15 = arith.constant 0.000000e+00 : f32
    %26 = vector.broadcast %cst_15 : f32 to vector<4x128xf32>
    %27 = arith.maximumf %25, %26 : vector<4x128xf32>
    %28 = math.absf %25 : vector<4x128xf32>
    %cst_16 = arith.constant 0.000000e+00 : f32
    %29 = vector.broadcast %cst_16 : f32 to vector<4x128xf32>
    %30 = arith.subf %29, %28 : vector<4x128xf32>
    %31 = math.exp %30 : vector<4x128xf32>
    %32 = math.log1p %31 : vector<4x128xf32>
    %33 = arith.addf %27, %32 : vector<4x128xf32>
    %34 = vector.extract_strided_slice %0 {offsets = [0, 0], sizes = [1, 128], strides = [1, 1]} : vector<8x128xf32> to vector<1x128xf32>
    %35 = vector.broadcast %34 : vector<1x128xf32> to vector<4x128xf32>
    %36 = arith.mulf %35, %25 : vector<4x128xf32>
    %37 = arith.subf %36, %33 : vector<4x128xf32>
    %38 = vector.extract_strided_slice %1 {offsets = [96, 0], sizes = [4, 1], strides = [1, 1]} : vector<128x1xf32> to vector<4x1xf32>
    %39 = vector.broadcast %38 : vector<4x1xf32> to vector<4x128xf32>
    %40 = arith.addf %37, %39 : vector<4x128xf32>
    %41 = vector.extract_strided_slice %40 {offsets = [0, 0], sizes = [1, 128], strides = [1, 1]} : vector<4x128xf32> to vector<1x128xf32>
    %42 = vector.extract_strided_slice %40 {offsets = [1, 0], sizes = [1, 128], strides = [1, 1]} : vector<4x128xf32> to vector<1x128xf32>
    %43 = vector.extract_strided_slice %40 {offsets = [2, 0], sizes = [1, 128], strides = [1, 1]} : vector<4x128xf32> to vector<1x128xf32>
    %44 = vector.extract_strided_slice %40 {offsets = [3, 0], sizes = [1, 128], strides = [1, 1]} : vector<4x128xf32> to vector<1x128xf32>
    %45 = vector.extract_strided_slice %23 {offsets = [4, 0], sizes = [4, 128], strides = [1, 1]} : vector<32x128xf32> to vector<4x128xf32>
    %cst_17 = arith.constant 0.000000e+00 : f32
    %46 = vector.broadcast %cst_17 : f32 to vector<4x128xf32>
    %47 = arith.maximumf %45, %46 : vector<4x128xf32>
    %48 = math.absf %45 : vector<4x128xf32>
    %cst_18 = arith.constant 0.000000e+00 : f32
    %49 = vector.broadcast %cst_18 : f32 to vector<4x128xf32>
    %50 = arith.subf %49, %48 : vector<4x128xf32>
    %51 = math.exp %50 : vector<4x128xf32>
    %52 = math.log1p %51 : vector<4x128xf32>
    %53 = arith.addf %47, %52 : vector<4x128xf32>
    %54 = vector.extract_strided_slice %0 {offsets = [1, 0], sizes = [1, 128], strides = [1, 1]} : vector<8x128xf32> to vector<1x128xf32>
    %55 = vector.broadcast %54 : vector<1x128xf32> to vector<4x128xf32>
    %56 = arith.mulf %55, %45 : vector<4x128xf32>
    %57 = arith.subf %56, %53 : vector<4x128xf32>
    %58 = vector.extract_strided_slice %1 {offsets = [100, 0], sizes = [4, 1], strides = [1, 1]} : vector<128x1xf32> to vector<4x1xf32>
    %59 = vector.broadcast %58 : vector<4x1xf32> to vector<4x128xf32>
    %60 = arith.addf %57, %59 : vector<4x128xf32>
    %61 = vector.extract_strided_slice %60 {offsets = [0, 0], sizes = [1, 128], strides = [1, 1]} : vector<4x128xf32> to vector<1x128xf32>
    %62 = arith.addf %41, %61 : vector<1x128xf32>
    %63 = vector.extract_strided_slice %60 {offsets = [2, 0], sizes = [1, 128], strides = [1, 1]} : vector<4x128xf32> to vector<1x128xf32>
    %64 = arith.addf %42, %63 : vector<1x128xf32>
    %65 = arith.maximumf %62, %64 : vector<1x128xf32>
    %66 = arith.subf %62, %65 : vector<1x128xf32>
    %67 = math.exp %66 : vector<1x128xf32>
    %68 = arith.subf %64, %65 : vector<1x128xf32>
    %69 = math.exp %68 : vector<1x128xf32>
    %70 = arith.addf %67, %69 : vector<1x128xf32>
    %71 = math.log %70 : vector<1x128xf32>
    %72 = arith.addf %65, %71 : vector<1x128xf32>
    %73 = vector.extract_strided_slice %60 {offsets = [1, 0], sizes = [1, 128], strides = [1, 1]} : vector<4x128xf32> to vector<1x128xf32>
    %74 = arith.addf %41, %73 : vector<1x128xf32>
    %75 = vector.extract_strided_slice %60 {offsets = [3, 0], sizes = [1, 128], strides = [1, 1]} : vector<4x128xf32> to vector<1x128xf32>
    %76 = arith.addf %42, %75 : vector<1x128xf32>
    %77 = arith.maximumf %74, %76 : vector<1x128xf32>
    %78 = arith.subf %74, %77 : vector<1x128xf32>
    %79 = math.exp %78 : vector<1x128xf32>
    %80 = arith.subf %76, %77 : vector<1x128xf32>
    %81 = math.exp %80 : vector<1x128xf32>
    %82 = arith.addf %79, %81 : vector<1x128xf32>
    %83 = math.log %82 : vector<1x128xf32>
    %84 = arith.addf %77, %83 : vector<1x128xf32>
    %85 = vector.extract_strided_slice %60 {offsets = [0, 0], sizes = [1, 128], strides = [1, 1]} : vector<4x128xf32> to vector<1x128xf32>
    %86 = arith.addf %43, %85 : vector<1x128xf32>
    %87 = vector.extract_strided_slice %60 {offsets = [2, 0], sizes = [1, 128], strides = [1, 1]} : vector<4x128xf32> to vector<1x128xf32>
    %88 = arith.addf %44, %87 : vector<1x128xf32>
    %89 = arith.maximumf %86, %88 : vector<1x128xf32>
    %90 = arith.subf %86, %89 : vector<1x128xf32>
    %91 = math.exp %90 : vector<1x128xf32>
    %92 = arith.subf %88, %89 : vector<1x128xf32>
    %93 = math.exp %92 : vector<1x128xf32>
    %94 = arith.addf %91, %93 : vector<1x128xf32>
    %95 = math.log %94 : vector<1x128xf32>
    %96 = arith.addf %89, %95 : vector<1x128xf32>
    %97 = vector.extract_strided_slice %60 {offsets = [1, 0], sizes = [1, 128], strides = [1, 1]} : vector<4x128xf32> to vector<1x128xf32>
    %98 = arith.addf %43, %97 : vector<1x128xf32>
    %99 = vector.extract_strided_slice %60 {offsets = [3, 0], sizes = [1, 128], strides = [1, 1]} : vector<4x128xf32> to vector<1x128xf32>
    %100 = arith.addf %44, %99 : vector<1x128xf32>
    %101 = arith.maximumf %98, %100 : vector<1x128xf32>
    %102 = arith.subf %98, %101 : vector<1x128xf32>
    %103 = math.exp %102 : vector<1x128xf32>
    %104 = arith.subf %100, %101 : vector<1x128xf32>
    %105 = math.exp %104 : vector<1x128xf32>
    %106 = arith.addf %103, %105 : vector<1x128xf32>
    %107 = math.log %106 : vector<1x128xf32>
    %108 = arith.addf %101, %107 : vector<1x128xf32>
    %109 = vector.extract_strided_slice %23 {offsets = [8, 0], sizes = [4, 128], strides = [1, 1]} : vector<32x128xf32> to vector<4x128xf32>
    %cst_19 = arith.constant 0.000000e+00 : f32
    %110 = vector.broadcast %cst_19 : f32 to vector<4x128xf32>
    %111 = arith.maximumf %109, %110 : vector<4x128xf32>
    %112 = math.absf %109 : vector<4x128xf32>
    %cst_20 = arith.constant 0.000000e+00 : f32
    %113 = vector.broadcast %cst_20 : f32 to vector<4x128xf32>
    %114 = arith.subf %113, %112 : vector<4x128xf32>
    %115 = math.exp %114 : vector<4x128xf32>
    %116 = math.log1p %115 : vector<4x128xf32>
    %117 = arith.addf %111, %116 : vector<4x128xf32>
    %118 = vector.extract_strided_slice %0 {offsets = [2, 0], sizes = [1, 128], strides = [1, 1]} : vector<8x128xf32> to vector<1x128xf32>
    %119 = vector.broadcast %118 : vector<1x128xf32> to vector<4x128xf32>
    %120 = arith.mulf %119, %109 : vector<4x128xf32>
    %121 = arith.subf %120, %117 : vector<4x128xf32>
    %122 = vector.extract_strided_slice %1 {offsets = [104, 0], sizes = [4, 1], strides = [1, 1]} : vector<128x1xf32> to vector<4x1xf32>
    %123 = vector.broadcast %122 : vector<4x1xf32> to vector<4x128xf32>
    %124 = arith.addf %121, %123 : vector<4x128xf32>
    %125 = vector.extract_strided_slice %124 {offsets = [0, 0], sizes = [1, 128], strides = [1, 1]} : vector<4x128xf32> to vector<1x128xf32>
    %126 = arith.addf %72, %125 : vector<1x128xf32>
    %127 = vector.extract_strided_slice %124 {offsets = [2, 0], sizes = [1, 128], strides = [1, 1]} : vector<4x128xf32> to vector<1x128xf32>
    %128 = arith.addf %84, %127 : vector<1x128xf32>
    %129 = arith.maximumf %126, %128 : vector<1x128xf32>
    %130 = arith.subf %126, %129 : vector<1x128xf32>
    %131 = math.exp %130 : vector<1x128xf32>
    %132 = arith.subf %128, %129 : vector<1x128xf32>
    %133 = math.exp %132 : vector<1x128xf32>
    %134 = arith.addf %131, %133 : vector<1x128xf32>
    %135 = math.log %134 : vector<1x128xf32>
    %136 = arith.addf %129, %135 : vector<1x128xf32>
    %137 = vector.extract_strided_slice %124 {offsets = [1, 0], sizes = [1, 128], strides = [1, 1]} : vector<4x128xf32> to vector<1x128xf32>
    %138 = arith.addf %72, %137 : vector<1x128xf32>
    %139 = vector.extract_strided_slice %124 {offsets = [3, 0], sizes = [1, 128], strides = [1, 1]} : vector<4x128xf32> to vector<1x128xf32>
    %140 = arith.addf %84, %139 : vector<1x128xf32>
    %141 = arith.maximumf %138, %140 : vector<1x128xf32>
    %142 = arith.subf %138, %141 : vector<1x128xf32>
    %143 = math.exp %142 : vector<1x128xf32>
    %144 = arith.subf %140, %141 : vector<1x128xf32>
    %145 = math.exp %144 : vector<1x128xf32>
    %146 = arith.addf %143, %145 : vector<1x128xf32>
    %147 = math.log %146 : vector<1x128xf32>
    %148 = arith.addf %141, %147 : vector<1x128xf32>
    %149 = vector.extract_strided_slice %124 {offsets = [0, 0], sizes = [1, 128], strides = [1, 1]} : vector<4x128xf32> to vector<1x128xf32>
    %150 = arith.addf %96, %149 : vector<1x128xf32>
    %151 = vector.extract_strided_slice %124 {offsets = [2, 0], sizes = [1, 128], strides = [1, 1]} : vector<4x128xf32> to vector<1x128xf32>
    %152 = arith.addf %108, %151 : vector<1x128xf32>
    %153 = arith.maximumf %150, %152 : vector<1x128xf32>
    %154 = arith.subf %150, %153 : vector<1x128xf32>
    %155 = math.exp %154 : vector<1x128xf32>
    %156 = arith.subf %152, %153 : vector<1x128xf32>
    %157 = math.exp %156 : vector<1x128xf32>
    %158 = arith.addf %155, %157 : vector<1x128xf32>
    %159 = math.log %158 : vector<1x128xf32>
    %160 = arith.addf %153, %159 : vector<1x128xf32>
    %161 = vector.extract_strided_slice %124 {offsets = [1, 0], sizes = [1, 128], strides = [1, 1]} : vector<4x128xf32> to vector<1x128xf32>
    %162 = arith.addf %96, %161 : vector<1x128xf32>
    %163 = vector.extract_strided_slice %124 {offsets = [3, 0], sizes = [1, 128], strides = [1, 1]} : vector<4x128xf32> to vector<1x128xf32>
    %164 = arith.addf %108, %163 : vector<1x128xf32>
    %165 = arith.maximumf %162, %164 : vector<1x128xf32>
    %166 = arith.subf %162, %165 : vector<1x128xf32>
    %167 = math.exp %166 : vector<1x128xf32>
    %168 = arith.subf %164, %165 : vector<1x128xf32>
    %169 = math.exp %168 : vector<1x128xf32>
    %170 = arith.addf %167, %169 : vector<1x128xf32>
    %171 = math.log %170 : vector<1x128xf32>
    %172 = arith.addf %165, %171 : vector<1x128xf32>
    %173 = vector.extract_strided_slice %23 {offsets = [12, 0], sizes = [4, 128], strides = [1, 1]} : vector<32x128xf32> to vector<4x128xf32>
    %cst_21 = arith.constant 0.000000e+00 : f32
    %174 = vector.broadcast %cst_21 : f32 to vector<4x128xf32>
    %175 = arith.maximumf %173, %174 : vector<4x128xf32>
    %176 = math.absf %173 : vector<4x128xf32>
    %cst_22 = arith.constant 0.000000e+00 : f32
    %177 = vector.broadcast %cst_22 : f32 to vector<4x128xf32>
    %178 = arith.subf %177, %176 : vector<4x128xf32>
    %179 = math.exp %178 : vector<4x128xf32>
    %180 = math.log1p %179 : vector<4x128xf32>
    %181 = arith.addf %175, %180 : vector<4x128xf32>
    %182 = vector.extract_strided_slice %0 {offsets = [3, 0], sizes = [1, 128], strides = [1, 1]} : vector<8x128xf32> to vector<1x128xf32>
    %183 = vector.broadcast %182 : vector<1x128xf32> to vector<4x128xf32>
    %184 = arith.mulf %183, %173 : vector<4x128xf32>
    %185 = arith.subf %184, %181 : vector<4x128xf32>
    %186 = vector.extract_strided_slice %1 {offsets = [108, 0], sizes = [4, 1], strides = [1, 1]} : vector<128x1xf32> to vector<4x1xf32>
    %187 = vector.broadcast %186 : vector<4x1xf32> to vector<4x128xf32>
    %188 = arith.addf %185, %187 : vector<4x128xf32>
    %189 = vector.extract_strided_slice %188 {offsets = [0, 0], sizes = [1, 128], strides = [1, 1]} : vector<4x128xf32> to vector<1x128xf32>
    %190 = arith.addf %136, %189 : vector<1x128xf32>
    %191 = vector.extract_strided_slice %188 {offsets = [2, 0], sizes = [1, 128], strides = [1, 1]} : vector<4x128xf32> to vector<1x128xf32>
    %192 = arith.addf %148, %191 : vector<1x128xf32>
    %193 = arith.maximumf %190, %192 : vector<1x128xf32>
    %194 = arith.subf %190, %193 : vector<1x128xf32>
    %195 = math.exp %194 : vector<1x128xf32>
    %196 = arith.subf %192, %193 : vector<1x128xf32>
    %197 = math.exp %196 : vector<1x128xf32>
    %198 = arith.addf %195, %197 : vector<1x128xf32>
    %199 = math.log %198 : vector<1x128xf32>
    %200 = arith.addf %193, %199 : vector<1x128xf32>
    %201 = vector.extract_strided_slice %188 {offsets = [1, 0], sizes = [1, 128], strides = [1, 1]} : vector<4x128xf32> to vector<1x128xf32>
    %202 = arith.addf %136, %201 : vector<1x128xf32>
    %203 = vector.extract_strided_slice %188 {offsets = [3, 0], sizes = [1, 128], strides = [1, 1]} : vector<4x128xf32> to vector<1x128xf32>
    %204 = arith.addf %148, %203 : vector<1x128xf32>
    %205 = arith.maximumf %202, %204 : vector<1x128xf32>
    %206 = arith.subf %202, %205 : vector<1x128xf32>
    %207 = math.exp %206 : vector<1x128xf32>
    %208 = arith.subf %204, %205 : vector<1x128xf32>
    %209 = math.exp %208 : vector<1x128xf32>
    %210 = arith.addf %207, %209 : vector<1x128xf32>
    %211 = math.log %210 : vector<1x128xf32>
    %212 = arith.addf %205, %211 : vector<1x128xf32>
    %213 = vector.extract_strided_slice %188 {offsets = [0, 0], sizes = [1, 128], strides = [1, 1]} : vector<4x128xf32> to vector<1x128xf32>
    %214 = arith.addf %160, %213 : vector<1x128xf32>
    %215 = vector.extract_strided_slice %188 {offsets = [2, 0], sizes = [1, 128], strides = [1, 1]} : vector<4x128xf32> to vector<1x128xf32>
    %216 = arith.addf %172, %215 : vector<1x128xf32>
    %217 = arith.maximumf %214, %216 : vector<1x128xf32>
    %218 = arith.subf %214, %217 : vector<1x128xf32>
    %219 = math.exp %218 : vector<1x128xf32>
    %220 = arith.subf %216, %217 : vector<1x128xf32>
    %221 = math.exp %220 : vector<1x128xf32>
    %222 = arith.addf %219, %221 : vector<1x128xf32>
    %223 = math.log %222 : vector<1x128xf32>
    %224 = arith.addf %217, %223 : vector<1x128xf32>
    %225 = vector.extract_strided_slice %188 {offsets = [1, 0], sizes = [1, 128], strides = [1, 1]} : vector<4x128xf32> to vector<1x128xf32>
    %226 = arith.addf %160, %225 : vector<1x128xf32>
    %227 = vector.extract_strided_slice %188 {offsets = [3, 0], sizes = [1, 128], strides = [1, 1]} : vector<4x128xf32> to vector<1x128xf32>
    %228 = arith.addf %172, %227 : vector<1x128xf32>
    %229 = arith.maximumf %226, %228 : vector<1x128xf32>
    %230 = arith.subf %226, %229 : vector<1x128xf32>
    %231 = math.exp %230 : vector<1x128xf32>
    %232 = arith.subf %228, %229 : vector<1x128xf32>
    %233 = math.exp %232 : vector<1x128xf32>
    %234 = arith.addf %231, %233 : vector<1x128xf32>
    %235 = math.log %234 : vector<1x128xf32>
    %236 = arith.addf %229, %235 : vector<1x128xf32>
    %237 = vector.extract_strided_slice %23 {offsets = [16, 0], sizes = [4, 128], strides = [1, 1]} : vector<32x128xf32> to vector<4x128xf32>
    %cst_23 = arith.constant 0.000000e+00 : f32
    %238 = vector.broadcast %cst_23 : f32 to vector<4x128xf32>
    %239 = arith.maximumf %237, %238 : vector<4x128xf32>
    %240 = math.absf %237 : vector<4x128xf32>
    %cst_24 = arith.constant 0.000000e+00 : f32
    %241 = vector.broadcast %cst_24 : f32 to vector<4x128xf32>
    %242 = arith.subf %241, %240 : vector<4x128xf32>
    %243 = math.exp %242 : vector<4x128xf32>
    %244 = math.log1p %243 : vector<4x128xf32>
    %245 = arith.addf %239, %244 : vector<4x128xf32>
    %246 = vector.extract_strided_slice %0 {offsets = [4, 0], sizes = [1, 128], strides = [1, 1]} : vector<8x128xf32> to vector<1x128xf32>
    %247 = vector.broadcast %246 : vector<1x128xf32> to vector<4x128xf32>
    %248 = arith.mulf %247, %237 : vector<4x128xf32>
    %249 = arith.subf %248, %245 : vector<4x128xf32>
    %250 = vector.extract_strided_slice %1 {offsets = [112, 0], sizes = [4, 1], strides = [1, 1]} : vector<128x1xf32> to vector<4x1xf32>
    %251 = vector.broadcast %250 : vector<4x1xf32> to vector<4x128xf32>
    %252 = arith.addf %249, %251 : vector<4x128xf32>
    %253 = vector.extract_strided_slice %252 {offsets = [0, 0], sizes = [1, 128], strides = [1, 1]} : vector<4x128xf32> to vector<1x128xf32>
    %254 = arith.addf %200, %253 : vector<1x128xf32>
    %255 = vector.extract_strided_slice %252 {offsets = [2, 0], sizes = [1, 128], strides = [1, 1]} : vector<4x128xf32> to vector<1x128xf32>
    %256 = arith.addf %212, %255 : vector<1x128xf32>
    %257 = arith.maximumf %254, %256 : vector<1x128xf32>
    %258 = arith.subf %254, %257 : vector<1x128xf32>
    %259 = math.exp %258 : vector<1x128xf32>
    %260 = arith.subf %256, %257 : vector<1x128xf32>
    %261 = math.exp %260 : vector<1x128xf32>
    %262 = arith.addf %259, %261 : vector<1x128xf32>
    %263 = math.log %262 : vector<1x128xf32>
    %264 = arith.addf %257, %263 : vector<1x128xf32>
    %265 = vector.extract_strided_slice %252 {offsets = [1, 0], sizes = [1, 128], strides = [1, 1]} : vector<4x128xf32> to vector<1x128xf32>
    %266 = arith.addf %200, %265 : vector<1x128xf32>
    %267 = vector.extract_strided_slice %252 {offsets = [3, 0], sizes = [1, 128], strides = [1, 1]} : vector<4x128xf32> to vector<1x128xf32>
    %268 = arith.addf %212, %267 : vector<1x128xf32>
    %269 = arith.maximumf %266, %268 : vector<1x128xf32>
    %270 = arith.subf %266, %269 : vector<1x128xf32>
    %271 = math.exp %270 : vector<1x128xf32>
    %272 = arith.subf %268, %269 : vector<1x128xf32>
    %273 = math.exp %272 : vector<1x128xf32>
    %274 = arith.addf %271, %273 : vector<1x128xf32>
    %275 = math.log %274 : vector<1x128xf32>
    %276 = arith.addf %269, %275 : vector<1x128xf32>
    %277 = vector.extract_strided_slice %252 {offsets = [0, 0], sizes = [1, 128], strides = [1, 1]} : vector<4x128xf32> to vector<1x128xf32>
    %278 = arith.addf %224, %277 : vector<1x128xf32>
    %279 = vector.extract_strided_slice %252 {offsets = [2, 0], sizes = [1, 128], strides = [1, 1]} : vector<4x128xf32> to vector<1x128xf32>
    %280 = arith.addf %236, %279 : vector<1x128xf32>
    %281 = arith.maximumf %278, %280 : vector<1x128xf32>
    %282 = arith.subf %278, %281 : vector<1x128xf32>
    %283 = math.exp %282 : vector<1x128xf32>
    %284 = arith.subf %280, %281 : vector<1x128xf32>
    %285 = math.exp %284 : vector<1x128xf32>
    %286 = arith.addf %283, %285 : vector<1x128xf32>
    %287 = math.log %286 : vector<1x128xf32>
    %288 = arith.addf %281, %287 : vector<1x128xf32>
    %289 = vector.extract_strided_slice %252 {offsets = [1, 0], sizes = [1, 128], strides = [1, 1]} : vector<4x128xf32> to vector<1x128xf32>
    %290 = arith.addf %224, %289 : vector<1x128xf32>
    %291 = vector.extract_strided_slice %252 {offsets = [3, 0], sizes = [1, 128], strides = [1, 1]} : vector<4x128xf32> to vector<1x128xf32>
    %292 = arith.addf %236, %291 : vector<1x128xf32>
    %293 = arith.maximumf %290, %292 : vector<1x128xf32>
    %294 = arith.subf %290, %293 : vector<1x128xf32>
    %295 = math.exp %294 : vector<1x128xf32>
    %296 = arith.subf %292, %293 : vector<1x128xf32>
    %297 = math.exp %296 : vector<1x128xf32>
    %298 = arith.addf %295, %297 : vector<1x128xf32>
    %299 = math.log %298 : vector<1x128xf32>
    %300 = arith.addf %293, %299 : vector<1x128xf32>
    %301 = vector.extract_strided_slice %23 {offsets = [20, 0], sizes = [4, 128], strides = [1, 1]} : vector<32x128xf32> to vector<4x128xf32>
    %cst_25 = arith.constant 0.000000e+00 : f32
    %302 = vector.broadcast %cst_25 : f32 to vector<4x128xf32>
    %303 = arith.maximumf %301, %302 : vector<4x128xf32>
    %304 = math.absf %301 : vector<4x128xf32>
    %cst_26 = arith.constant 0.000000e+00 : f32
    %305 = vector.broadcast %cst_26 : f32 to vector<4x128xf32>
    %306 = arith.subf %305, %304 : vector<4x128xf32>
    %307 = math.exp %306 : vector<4x128xf32>
    %308 = math.log1p %307 : vector<4x128xf32>
    %309 = arith.addf %303, %308 : vector<4x128xf32>
    %310 = vector.extract_strided_slice %0 {offsets = [5, 0], sizes = [1, 128], strides = [1, 1]} : vector<8x128xf32> to vector<1x128xf32>
    %311 = vector.broadcast %310 : vector<1x128xf32> to vector<4x128xf32>
    %312 = arith.mulf %311, %301 : vector<4x128xf32>
    %313 = arith.subf %312, %309 : vector<4x128xf32>
    %314 = vector.extract_strided_slice %1 {offsets = [116, 0], sizes = [4, 1], strides = [1, 1]} : vector<128x1xf32> to vector<4x1xf32>
    %315 = vector.broadcast %314 : vector<4x1xf32> to vector<4x128xf32>
    %316 = arith.addf %313, %315 : vector<4x128xf32>
    %317 = vector.extract_strided_slice %316 {offsets = [0, 0], sizes = [1, 128], strides = [1, 1]} : vector<4x128xf32> to vector<1x128xf32>
    %318 = arith.addf %264, %317 : vector<1x128xf32>
    %319 = vector.extract_strided_slice %316 {offsets = [2, 0], sizes = [1, 128], strides = [1, 1]} : vector<4x128xf32> to vector<1x128xf32>
    %320 = arith.addf %276, %319 : vector<1x128xf32>
    %321 = arith.maximumf %318, %320 : vector<1x128xf32>
    %322 = arith.subf %318, %321 : vector<1x128xf32>
    %323 = math.exp %322 : vector<1x128xf32>
    %324 = arith.subf %320, %321 : vector<1x128xf32>
    %325 = math.exp %324 : vector<1x128xf32>
    %326 = arith.addf %323, %325 : vector<1x128xf32>
    %327 = math.log %326 : vector<1x128xf32>
    %328 = arith.addf %321, %327 : vector<1x128xf32>
    %329 = vector.extract_strided_slice %316 {offsets = [1, 0], sizes = [1, 128], strides = [1, 1]} : vector<4x128xf32> to vector<1x128xf32>
    %330 = arith.addf %264, %329 : vector<1x128xf32>
    %331 = vector.extract_strided_slice %316 {offsets = [3, 0], sizes = [1, 128], strides = [1, 1]} : vector<4x128xf32> to vector<1x128xf32>
    %332 = arith.addf %276, %331 : vector<1x128xf32>
    %333 = arith.maximumf %330, %332 : vector<1x128xf32>
    %334 = arith.subf %330, %333 : vector<1x128xf32>
    %335 = math.exp %334 : vector<1x128xf32>
    %336 = arith.subf %332, %333 : vector<1x128xf32>
    %337 = math.exp %336 : vector<1x128xf32>
    %338 = arith.addf %335, %337 : vector<1x128xf32>
    %339 = math.log %338 : vector<1x128xf32>
    %340 = arith.addf %333, %339 : vector<1x128xf32>
    %341 = vector.extract_strided_slice %316 {offsets = [0, 0], sizes = [1, 128], strides = [1, 1]} : vector<4x128xf32> to vector<1x128xf32>
    %342 = arith.addf %288, %341 : vector<1x128xf32>
    %343 = vector.extract_strided_slice %316 {offsets = [2, 0], sizes = [1, 128], strides = [1, 1]} : vector<4x128xf32> to vector<1x128xf32>
    %344 = arith.addf %300, %343 : vector<1x128xf32>
    %345 = arith.maximumf %342, %344 : vector<1x128xf32>
    %346 = arith.subf %342, %345 : vector<1x128xf32>
    %347 = math.exp %346 : vector<1x128xf32>
    %348 = arith.subf %344, %345 : vector<1x128xf32>
    %349 = math.exp %348 : vector<1x128xf32>
    %350 = arith.addf %347, %349 : vector<1x128xf32>
    %351 = math.log %350 : vector<1x128xf32>
    %352 = arith.addf %345, %351 : vector<1x128xf32>
    %353 = vector.extract_strided_slice %316 {offsets = [1, 0], sizes = [1, 128], strides = [1, 1]} : vector<4x128xf32> to vector<1x128xf32>
    %354 = arith.addf %288, %353 : vector<1x128xf32>
    %355 = vector.extract_strided_slice %316 {offsets = [3, 0], sizes = [1, 128], strides = [1, 1]} : vector<4x128xf32> to vector<1x128xf32>
    %356 = arith.addf %300, %355 : vector<1x128xf32>
    %357 = arith.maximumf %354, %356 : vector<1x128xf32>
    %358 = arith.subf %354, %357 : vector<1x128xf32>
    %359 = math.exp %358 : vector<1x128xf32>
    %360 = arith.subf %356, %357 : vector<1x128xf32>
    %361 = math.exp %360 : vector<1x128xf32>
    %362 = arith.addf %359, %361 : vector<1x128xf32>
    %363 = math.log %362 : vector<1x128xf32>
    %364 = arith.addf %357, %363 : vector<1x128xf32>
    %365 = vector.extract_strided_slice %23 {offsets = [24, 0], sizes = [4, 128], strides = [1, 1]} : vector<32x128xf32> to vector<4x128xf32>
    %cst_27 = arith.constant 0.000000e+00 : f32
    %366 = vector.broadcast %cst_27 : f32 to vector<4x128xf32>
    %367 = arith.maximumf %365, %366 : vector<4x128xf32>
    %368 = math.absf %365 : vector<4x128xf32>
    %cst_28 = arith.constant 0.000000e+00 : f32
    %369 = vector.broadcast %cst_28 : f32 to vector<4x128xf32>
    %370 = arith.subf %369, %368 : vector<4x128xf32>
    %371 = math.exp %370 : vector<4x128xf32>
    %372 = math.log1p %371 : vector<4x128xf32>
    %373 = arith.addf %367, %372 : vector<4x128xf32>
    %374 = vector.extract_strided_slice %0 {offsets = [6, 0], sizes = [1, 128], strides = [1, 1]} : vector<8x128xf32> to vector<1x128xf32>
    %375 = vector.broadcast %374 : vector<1x128xf32> to vector<4x128xf32>
    %376 = arith.mulf %375, %365 : vector<4x128xf32>
    %377 = arith.subf %376, %373 : vector<4x128xf32>
    %378 = vector.extract_strided_slice %1 {offsets = [120, 0], sizes = [4, 1], strides = [1, 1]} : vector<128x1xf32> to vector<4x1xf32>
    %379 = vector.broadcast %378 : vector<4x1xf32> to vector<4x128xf32>
    %380 = arith.addf %377, %379 : vector<4x128xf32>
    %381 = vector.extract_strided_slice %380 {offsets = [0, 0], sizes = [1, 128], strides = [1, 1]} : vector<4x128xf32> to vector<1x128xf32>
    %382 = arith.addf %328, %381 : vector<1x128xf32>
    %383 = vector.extract_strided_slice %380 {offsets = [2, 0], sizes = [1, 128], strides = [1, 1]} : vector<4x128xf32> to vector<1x128xf32>
    %384 = arith.addf %340, %383 : vector<1x128xf32>
    %385 = arith.maximumf %382, %384 : vector<1x128xf32>
    %386 = arith.subf %382, %385 : vector<1x128xf32>
    %387 = math.exp %386 : vector<1x128xf32>
    %388 = arith.subf %384, %385 : vector<1x128xf32>
    %389 = math.exp %388 : vector<1x128xf32>
    %390 = arith.addf %387, %389 : vector<1x128xf32>
    %391 = math.log %390 : vector<1x128xf32>
    %392 = arith.addf %385, %391 : vector<1x128xf32>
    %393 = vector.extract_strided_slice %380 {offsets = [1, 0], sizes = [1, 128], strides = [1, 1]} : vector<4x128xf32> to vector<1x128xf32>
    %394 = arith.addf %328, %393 : vector<1x128xf32>
    %395 = vector.extract_strided_slice %380 {offsets = [3, 0], sizes = [1, 128], strides = [1, 1]} : vector<4x128xf32> to vector<1x128xf32>
    %396 = arith.addf %340, %395 : vector<1x128xf32>
    %397 = arith.maximumf %394, %396 : vector<1x128xf32>
    %398 = arith.subf %394, %397 : vector<1x128xf32>
    %399 = math.exp %398 : vector<1x128xf32>
    %400 = arith.subf %396, %397 : vector<1x128xf32>
    %401 = math.exp %400 : vector<1x128xf32>
    %402 = arith.addf %399, %401 : vector<1x128xf32>
    %403 = math.log %402 : vector<1x128xf32>
    %404 = arith.addf %397, %403 : vector<1x128xf32>
    %405 = vector.extract_strided_slice %380 {offsets = [0, 0], sizes = [1, 128], strides = [1, 1]} : vector<4x128xf32> to vector<1x128xf32>
    %406 = arith.addf %352, %405 : vector<1x128xf32>
    %407 = vector.extract_strided_slice %380 {offsets = [2, 0], sizes = [1, 128], strides = [1, 1]} : vector<4x128xf32> to vector<1x128xf32>
    %408 = arith.addf %364, %407 : vector<1x128xf32>
    %409 = arith.maximumf %406, %408 : vector<1x128xf32>
    %410 = arith.subf %406, %409 : vector<1x128xf32>
    %411 = math.exp %410 : vector<1x128xf32>
    %412 = arith.subf %408, %409 : vector<1x128xf32>
    %413 = math.exp %412 : vector<1x128xf32>
    %414 = arith.addf %411, %413 : vector<1x128xf32>
    %415 = math.log %414 : vector<1x128xf32>
    %416 = arith.addf %409, %415 : vector<1x128xf32>
    %417 = vector.extract_strided_slice %380 {offsets = [1, 0], sizes = [1, 128], strides = [1, 1]} : vector<4x128xf32> to vector<1x128xf32>
    %418 = arith.addf %352, %417 : vector<1x128xf32>
    %419 = vector.extract_strided_slice %380 {offsets = [3, 0], sizes = [1, 128], strides = [1, 1]} : vector<4x128xf32> to vector<1x128xf32>
    %420 = arith.addf %364, %419 : vector<1x128xf32>
    %421 = arith.maximumf %418, %420 : vector<1x128xf32>
    %422 = arith.subf %418, %421 : vector<1x128xf32>
    %423 = math.exp %422 : vector<1x128xf32>
    %424 = arith.subf %420, %421 : vector<1x128xf32>
    %425 = math.exp %424 : vector<1x128xf32>
    %426 = arith.addf %423, %425 : vector<1x128xf32>
    %427 = math.log %426 : vector<1x128xf32>
    %428 = arith.addf %421, %427 : vector<1x128xf32>
    %429 = vector.extract_strided_slice %23 {offsets = [28, 0], sizes = [4, 128], strides = [1, 1]} : vector<32x128xf32> to vector<4x128xf32>
    %cst_29 = arith.constant 0.000000e+00 : f32
    %430 = vector.broadcast %cst_29 : f32 to vector<4x128xf32>
    %431 = arith.maximumf %429, %430 : vector<4x128xf32>
    %432 = math.absf %429 : vector<4x128xf32>
    %cst_30 = arith.constant 0.000000e+00 : f32
    %433 = vector.broadcast %cst_30 : f32 to vector<4x128xf32>
    %434 = arith.subf %433, %432 : vector<4x128xf32>
    %435 = math.exp %434 : vector<4x128xf32>
    %436 = math.log1p %435 : vector<4x128xf32>
    %437 = arith.addf %431, %436 : vector<4x128xf32>
    %438 = vector.extract_strided_slice %0 {offsets = [7, 0], sizes = [1, 128], strides = [1, 1]} : vector<8x128xf32> to vector<1x128xf32>
    %439 = vector.broadcast %438 : vector<1x128xf32> to vector<4x128xf32>
    %440 = arith.mulf %439, %429 : vector<4x128xf32>
    %441 = arith.subf %440, %437 : vector<4x128xf32>
    %442 = vector.extract_strided_slice %441 {offsets = [0, 0], sizes = [1, 128], strides = [1, 1]} : vector<4x128xf32> to vector<1x128xf32>
    %443 = arith.addf %392, %442 : vector<1x128xf32>
    %444 = vector.extract_strided_slice %441 {offsets = [2, 0], sizes = [1, 128], strides = [1, 1]} : vector<4x128xf32> to vector<1x128xf32>
    %445 = arith.addf %404, %444 : vector<1x128xf32>
    %446 = arith.maximumf %443, %445 : vector<1x128xf32>
    %447 = arith.subf %443, %446 : vector<1x128xf32>
    %448 = math.exp %447 : vector<1x128xf32>
    %449 = arith.subf %445, %446 : vector<1x128xf32>
    %450 = math.exp %449 : vector<1x128xf32>
    %451 = arith.addf %448, %450 : vector<1x128xf32>
    %452 = math.log %451 : vector<1x128xf32>
    %453 = arith.addf %446, %452 : vector<1x128xf32>
    %c0_31 = arith.constant 0 : index
    %c0_32 = arith.constant 0 : index
    %454 = vector.load %arg7[%c0_31, %c0_32] : memref<2x128xf32, #tpu.memory_space<vmem>>, vector<1x128xf32>
    tpu.vector_store %arg7[%c0_31, %c0_32], %453 {strides = array<i32>} : memref<2x128xf32, #tpu.memory_space<vmem>>, vector<1x128xf32>,
    %455 = vector.extract_strided_slice %441 {offsets = [0, 0], sizes = [1, 128], strides = [1, 1]} : vector<4x128xf32> to vector<1x128xf32>
    %456 = arith.addf %416, %455 : vector<1x128xf32>
    %457 = vector.extract_strided_slice %441 {offsets = [2, 0], sizes = [1, 128], strides = [1, 1]} : vector<4x128xf32> to vector<1x128xf32>
    %458 = arith.addf %428, %457 : vector<1x128xf32>
    %459 = arith.maximumf %456, %458 : vector<1x128xf32>
    %460 = arith.subf %456, %459 : vector<1x128xf32>
    %461 = math.exp %460 : vector<1x128xf32>
    %462 = arith.subf %458, %459 : vector<1x128xf32>
    %463 = math.exp %462 : vector<1x128xf32>
    %464 = arith.addf %461, %463 : vector<1x128xf32>
    %465 = math.log %464 : vector<1x128xf32>
    %466 = arith.addf %459, %465 : vector<1x128xf32>
    %c1 = arith.constant 1 : index
    %c0_33 = arith.constant 0 : index
    %467 = vector.load %arg7[%c1, %c0_33] : memref<2x128xf32, #tpu.memory_space<vmem>>, vector<1x128xf32>
    tpu.vector_store %arg7[%c1, %c0_33], %466 {strides = array<i32>} : memref<2x128xf32, #tpu.memory_space<vmem>>, vector<1x128xf32>,
    return
  }
  func.func @transform_0(%arg0: i32) -> (i32, i32) {
    %c0_i32 = arith.constant 0 : i32
    %c0_i32_0 = arith.constant 0 : i32
    return %c0_i32, %arg0 : i32, i32
  }
  func.func @transform_1(%arg0: i32) -> (i32, i32) {
    %c0_i32 = arith.constant 0 : i32
    %c0_i32_0 = arith.constant 0 : i32
    %c0_i32_1 = arith.constant 0 : i32
    return %c0_i32, %c0_i32_0 : i32, i32
  }
  func.func @transform_2(%arg0: i32) -> (i32, i32) {
    %c0_i32 = arith.constant 0 : i32
    %c0_i32_0 = arith.constant 0 : i32
    %c0_i32_1 = arith.constant 0 : i32
    return %c0_i32, %c0_i32_0 : i32, i32
  }
  func.func @transform_3(%arg0: i32) -> (i32, i32) {
    %c0_i32 = arith.constant 0 : i32
    %c0_i32_0 = arith.constant 0 : i32
    %c0_i32_1 = arith.constant 0 : i32
    return %c0_i32, %c0_i32_0 : i32, i32
  }
  func.func @transform_4(%arg0: i32) -> (i32, i32) {
    %c0_i32 = arith.constant 0 : i32
    %c0_i32_0 = arith.constant 0 : i32
    %c0_i32_1 = arith.constant 0 : i32
    return %c0_i32, %c0_i32_0 : i32, i32
  }
  func.func @transform_5(%arg0: i32) -> (i32, i32) {
    %c0_i32 = arith.constant 0 : i32
    %c0_i32_0 = arith.constant 0 : i32
    return %c0_i32, %arg0 : i32, i32
  }
  func.func @transform_6(%arg0: i32) -> (i32, i32) {
    %c0_i32 = arith.constant 0 : i32
    %c0_i32_0 = arith.constant 0 : i32
    return %c0_i32, %arg0 : i32, i32
  }
}

</mosaic_0001>

<bundles_post_ra>
// kernel: dart_forward.1
= control target key start
LH: loop header
LB: loop body
LE: loop exit
PB: predicated region body
PF: predicated region fallthrough
CT: control target
= control target key end

     0   :  { %s1605_s21 = smov 0   ;;  %s1607_s22 = smov 0   ;;  %s1867_s0 = inlined_call_operand.vmem [shape: f32[8,256], index: 0, kind: input, shape index: {}]   ;;  %s1868_s1 = inlined_call_operand.vmem [shape: bf16[32,8], index: 1, kind: input, shape index: {}]   ;;  %s1869_s2 = inlined_call_operand.vmem [shape: bf16[32,32], index: 2, kind: input, shape index: {}]   ;;  %s1870_s3 = inlined_call_operand.vmem [shape: bf16[32,32], index: 3, kind: input, shape index: {}]   ;;  %s1871_s4 = inlined_call_operand.vmem [shape: f32[128,1], index: 4, kind: input, shape index: {}]   ;;  %s1872_s5 = inlined_call_operand.vmem [shape: f32[32,256], index: 5, kind: output, shape index: {0}]   ;;  %s1873_s6 = inlined_call_operand.vmem [shape: f32[2,256], index: 6, kind: output, shape index: {1}]  }
   0x1   :  { %s1609_s23 = smov 0  }
   0x2 LB: > { %s1618_s24 = sadd.s32 4294967295, %s1567_s23   ;;  %s1620_s25 = sadd.s32 1, %s1567_s23   ;;  %s1567_s23 = sphi %s1609_s23, %s1877_s23   ;;  %s1563_s22 = sphi %s1607_s22, %s1876_s22   ;;  %s1559_s21 = sphi %s1605_s21, %s1875_s21  }
   0x3   : > { %s131_s26 = ssub.s32 %s1567_s23, %s1620_s25  ;;  %s134_s27 = sadd.s32 1, %s1563_s22 }
   0x4   : > { %p132_p0 = scmp.eq.s32.totalorder %s131_s26, 0  ;;  %p144_p1 = scmp.ne.s32.totalorder %s1563_s22, %s1559_s21 }
   0x5   : > { %p145_p2 = scmp.eq.s32.totalorder %s1618_s24, 1  ;;  %p1286_p3 = scmp.ge.s32.totalorder %s1567_s23, 1 }
   0x6   : > { %s1628_s28 = scalar_select %p132_p0, %s1563_s22, %s134_s27  }
   0x7   : > { %p1630_p4 = por %p145_p2, %p144_p1  ;;  %p214_p5 = scmp.lt.s32.totalorder %s1567_s23, 3 }
   0x9   : > { %p215_p6 = pnand %p1286_p3, %p214_p5 }
   0xa   : > { %p246_p7 = scmp.lt.s32.totalorder (!%p215_p6), %s1618_s24, 1  ;;  %s237_s23 = sand.u32 (!%p215_p6), 1, %s1559_s21  }
   0xb   : > { %218 = sbr.rel (%p215_p6) target bundleno = 1016 (0x3f8), region = 40  ;;  %s1287_s26 = sshll.u32 (!%p215_p6), %s237_s23, 5 }
   0xc   : > { %s1730_s21 = scalar_lea.vmem (!%p215_p6), [#allocation2], %s1287_s26 }
  0x10   : > { %v1367_v0 = vld [vmem:[%s1868_s1] sm:$0xff]   ;;  %vm307_vm0 = vcmask 64512   ;;  %s1639_s8 = scalar_select %p246_p7, %s1618_s24, 1  ;;  %v258_v1 = vld [vmem:[%s1871_s4 + $0x10] sm:$0xff]  ;;  %v1569_v2 = vmov 0   ;;  %v259_v4 = vld [vmem:[%s1871_s4 + $0x18] sm:$0xff]  ;;  %v577_v63 = vlaneseq }
  0x11   : > { %1319 = vmatprep.mubr.msk.bf16.mxu0 %vm307_vm0, %v1367_v0  ;;  %1365 = vset.pattern.permute.xlu0 %v1569_v2  ;;  %v256_v3 = vld [vmem:[%s1871_s4] sm:$0xff]  ;;  %vm314_vm1 = vcmask 1043456   ;;  %v257_v6 = vld [vmem:[%s1871_s4 + $0x8] sm:$0xff]  ;;  %v262_v9 = vld [vmem:[%s1871_s4 + $0x30] sm:$0xff]  ;;  %vm407_vm2 = vcmask 261120  }
  0x12   : > { %s1288_s13 = sshll.u32 %s1639_s8, 3  ;;  %289 = vperm.xlu0 %1365, %v258_v1   ;;  %1366 = vset.pattern.permute.xlu1 %v1569_v2  ;;  %v1368_v8 = vld [vmem:[%s1868_s1 + $0x8] sm:$0xff]   ;;  %v263_v11 = vld [vmem:[%s1871_s4 + $0x38] sm:$0xff]  ;;  %v260_v12 = vld [vmem:[%s1871_s4 + $0x20] sm:$0xff]  ;;  %v1718_v0 = vshrl.u32 %v577_v63, 7  ;;  %s1289_s27 = sshll.u32 %s1639_s8, 1 }
  0x13   : > { %s249_s16 = scalar_lea.vmem %s1867_s0, %s1288_s13  ;;  %279 = vperm.xlu1 %1366, %v256_v3   ;;  %v261_v13 = vld [vmem:[%s1871_s4 + $0x28] sm:$0xff]  ;;  %v264_v14 = vld [vmem:[%s1871_s4 + $0x40] sm:$0xff]  ;;  %v266_v18 = vld [vmem:[%s1871_s4 + $0x50] sm:$0xff]  ;;  %s253_s9 = scalar_lea.vmem %s1873_s6, %s1289_s27 }
  0x14   : > { %v1655_v5 = vld [vmem:[%s249_s16] sm:$0xff]  ;;  %v265_v16 = vld [vmem:[%s1871_s4 + $0x48] sm:$0xff]  ;;  %v270_v19 = vld [vmem:[%s1871_s4 + $0x70] sm:$0xff]  ;;  %v871_v2 = vsub.s32 4, %v1718_v0  ;;  %v946_v3 = vsub.s32 5, %v1718_v0  ;;  %s1303_s8 = sshll.u32 (%p1630_p4), %s1618_s24, 3 }
  0x15   : > { %v276_v7 = vpack.c.bf16 %v1655_v5, %v1655_v5  ;;  %v268_v15 = vld [vmem:[%s1871_s4 + $0x60] sm:$0xff]  ;;  %v269_v17 = vld [vmem:[%s1871_s4 + $0x68] sm:$0xff]  ;;  %v267_v20 = vld [vmem:[%s1871_s4 + $0x58] sm:$0xff]  ;;  %s1159_s12 = scalar_lea.vmem (%p1630_p4), %s1872_s5, %s1303_s8 }
  0x16   : > { %294 = vperm.xlu0 %1365, %v259_v4   ;;  %v271_v21 = vld [vmem:[%s1871_s4 + $0x78] sm:$0xff]  ;;  %v1369_v22 = vld [vmem:[%s1869_s2] sm:$0xff]   ;;  %v1370_v41 = vld [vmem:[%s1869_s2 + $0x8] sm:$0xff]  }
  0x17   : > { %1339 = vmatprep.subr.msk.bf16.mxu0 %vm314_vm1, %v276_v7  ;;  %v316_v10 = vsel %vm314_vm1, %v276_v7, 0  ;;  %284 = vperm.xlu1 %1366, %v257_v6   ;;  %v1371_v42 = vld [vmem:[%s1870_s3] sm:$0xff]   ;;  %v1372_v61 = vld [vmem:[%s1870_s3 + $0x8] sm:$0xff]   ;;  %v1033_v6 = vsub.s32 6, %v1718_v0  ;;  %v872_v7 = vrot.slane %v1655_v5, %v871_v2 }
  0x18   : > { %1318 = vmatpush3.bf16.msra.mxu0 %v316_v10  ;;  %1327 = vmatprep.mubr.msk.bf16.mxu1 %vm407_vm2, %v1369_v22  ;;  %v1108_v10 = vsub.s32 7, %v1718_v0 }
  0x1a   : > { %389 = vperm.xlu0 %1365, %v262_v9  }
  0x1b   : > { %1320 = vmatmul.mubr.msk.bf16.vlgmr.msra.gmra.mxu0 %vm307_vm0, %v1368_v8  ;;  %394 = vperm.xlu1 %1366, %v263_v11   ;;  %v947_v8 = vrot.slane %v1655_v5, %v946_v3 }
  0x1c   : > { %1335 = vmatprep.mubr.msk.bf16.mxu0 %vm407_vm2, %v1371_v42 }
  0x1e   : > { %379 = vperm.xlu0 %1365, %v260_v12  }
  0x1f   : > { %384 = vperm.xlu1 %1366, %v261_v13   ;;  %v1034_v13 = vrot.slane %v1655_v5, %v1033_v6 }
  0x22   : > { %475 = vperm.xlu0 %1365, %v264_v14  }
  0x23   : > { %585 = vperm.xlu1 %1366, %v268_v15  }
  0x26   : > { %480 = vperm.xlu0 %1365, %v265_v16  }
  0x27   : > { %715 = vperm.xlu1 %1366, %v269_v17   ;;  %v784_v17 = vsub.s32 3, %v1718_v0 }
  0x2a   : > { %485 = vperm.xlu0 %1365, %v266_v18  }
  0x2b   : > { %877 = vperm.xlu1 %1366, %v270_v19  }
  0x2e   : > { %490 = vperm.xlu0 %1365, %v267_v20  }
  0x2f   : > { %1039 = vperm.xlu1 %1366, %v271_v21   ;;  %v1109_v21 = vrot.slane %v1655_v5, %v1108_v10 }
  0x8d   : > { %v290_v23 = vpop.permute.xlu0 %289 }
  0x8e   : > { %v280_v24 = vpop.permute.xlu1 %279 }
  0x91   : > { %v295_v28 = vpop.permute.xlu0 %294 }
  0x92   : > { %v285_v32 = vpop.permute.xlu1 %284 }
  0x95   : > { %v390_v43 = vpop.permute.xlu0 %389 }
  0x96   : > { %v395_v44 = vpop.permute.xlu1 %394 }
  0x99   : > { %v380_v48 = vpop.permute.xlu0 %379 }
  0x9a   : > { %v385_v52 = vpop.permute.xlu1 %384 }
  0x9d   : > { %v476_v62 = vpop.permute.xlu0 %475 }
  0xa1   : > { %v481_v1 = vpop.permute.xlu0 %480 }
  0xa5   : > { %v486_v4 = vpop.permute.xlu0 %485 }
  0xa9   : > { %v491_v18 = vpop.permute.xlu0 %490 }
  0xdb   : > { %v1321_v25 = vpop.f32.mrf.mxu0 }
  0xdc   : > { %v361_v27 = vadd.f32 %v1321_v25, %v290_v23 }
  0xdd   : > { %v352_v26 = vpop.f32.mrf.mxu0 }
  0xde   : > { %v353_v30 = vadd.f32 %v352_v26, %v280_v24  ;;  %v369_v34 = vmax.f32 %v361_v27, 0.0 }
  0xdf   : > { %v1322_v29 = vpop.f32.mrf.mxu0 }
  0xe0   : > { %v364_v31 = vadd.f32 %v1322_v29, %v295_v28  ;;  %v367_v37 = vmax.f32 %v353_v30, 0.0  ;;  %v785_v29 = vrot.slane %v1655_v5, %v784_v17 }
  0xe1   : > { %v355_v33 = vpop.f32.mrf.mxu0 }
  0xe2   : > { %v370_v35 = vmax.f32 %v364_v31, 0.0  ;;  %v356_v36 = vadd.f32 %v355_v33, %v285_v32 }
  0xe4   : > { %v368_v38 = vmax.f32 %v356_v36, 0.0  ;;  %v376_v39 = vpack.c.bf16 %v370_v35, %v369_v34 }
  0xe6   : > { %v375_v40 = vpack.c.bf16 %v368_v38, %v367_v37  ;;  %1323 = vmatprep.subr.bf16.mxu1 %v376_v39 }
  0xe7   : > { %1324 = vmatpush3.bf16.msra.mxu1 %v376_v39 }
  0xe8   : > { %1325 = vmatprep.subr.bf16.mxu1 %v375_v40 }
  0xeb   : > { %1326 = vmatpush3.bf16.msra.mxu1 %v375_v40 }
  0xee   : > { %1328 = vmatmul.mubr.msk.bf16.vlgmr.msra.gmra.mxu1 %vm407_vm2, %v1370_v41 }
 0x1ae   : > { %v1329_v45 = vpop.f32.mrf.mxu1 }
 0x1af   : > { %v457_v47 = vadd.f32 %v1329_v45, %v390_v43 }
 0x1b0   : > { %v448_v46 = vpop.f32.mrf.mxu1 }
 0x1b1   : > { %v449_v50 = vadd.f32 %v448_v46, %v380_v48  ;;  %v465_v54 = vmax.f32 %v457_v47, 0.0 }
 0x1b2   : > { %v1330_v49 = vpop.f32.mrf.mxu1 }
 0x1b3   : > { %v460_v51 = vadd.f32 %v1330_v49, %v395_v44  ;;  %v463_v57 = vmax.f32 %v449_v50, 0.0 }
 0x1b4   : > { %v451_v53 = vpop.f32.mrf.mxu1 }
 0x1b5   : > { %v466_v55 = vmax.f32 %v460_v51, 0.0  ;;  %v452_v56 = vadd.f32 %v451_v53, %v385_v52  ;;  %v579_v53 = vsub.s32 0, %v1718_v0 }
 0x1b7   : > { %v472_v58 = vpack.c.bf16 %v466_v55, %v465_v54  ;;  %v464_v59 = vmax.f32 %v452_v56, 0.0  ;;  %v591_v54 = vsub.s32 1, %v1718_v0  ;;  %v580_v2 = vrot.slane %v1655_v5, %v579_v53 }
 0x1b9   : > { %v471_v60 = vpack.c.bf16 %v464_v59, %v463_v57  ;;  %1331 = vmatprep.subr.bf16.mxu0 %v472_v58  ;;  %v592_v3 = vrot.slane %v1655_v5, %v591_v54 }
 0x1ba   : > { %1332 = vmatpush3.bf16.msra.mxu0 %v472_v58 }
 0x1bb   : > { %1333 = vmatprep.subr.bf16.mxu0 %v471_v60 }
 0x1be   : > { %1334 = vmatpush3.bf16.msra.mxu0 %v471_v60 }
 0x1c1   : > { %1336 = vmatmul.mubr.msk.bf16.vlgmr.msra.gmra.mxu0 %vm407_vm2, %v1372_v61 }
 0x281   : > { %v1337_v9 = vpop.f32.mrf.mxu0 }
 0x282   : > { %v1727_v11 = vadd.f32 %v1337_v9, %v486_v4 }
 0x283   : > { %v543_v12 = vpop.f32.mrf.mxu0 }
 0x284   : > { %560 = vst [vmem:[%s1730_s21 + $0x10] sm:$0xff] %v1727_v11  ;;  %v855_v14 = vand.u32 2147483647, %v1727_v11  ;;  %v1736_v15 = vmul.f32 %v872_v7, %v1727_v11  ;;  %v1739_v16 = vmul.f32 %v947_v8, %v1727_v11  ;;  %v1742_v19 = vadd.f32 %v543_v12, %v476_v62 }
 0x285   : > { %v1338_v20 = vpop.f32.mrf.mxu0  ;;  %v854_v61 = vmax.f32 %v1727_v11, 0.0 }
 0x286   : > { %v856_v22 = vsub.f32 0.0, %v855_v14  ;;  %v1745_v23 = vadd.f32 %v1338_v20, %v491_v18  ;;  %558 = vst [vmem:[%s1730_s21] sm:$0xff] %v1742_v19  ;;  %v563_v24 = vand.u32 2147483647, %v1742_v19  ;;  %v562_v10 = vmax.f32 %v1742_v19, 0.0 }
 0x287   : > { %v546_v25 = vpop.f32.mrf.mxu0 }
 0x288   : > { %v857_v26 = vmul.f32 1.442695, %v856_v22  ;;  %561 = vst [vmem:[%s1730_s21 + $0x18] sm:$0xff] %v1745_v23  ;;  %v1017_v27 = vand.u32 2147483647, %v1745_v23  ;;  %v1754_v28 = vmul.f32 %v1034_v13, %v1745_v23  ;;  %v564_v30 = vsub.f32 0.0, %v563_v24 }
 0x289   : > { %v1758_v31 = vmul.f32 %v1109_v21, %v1745_v23  ;;  %v1760_v32 = vadd.f32 %v546_v25, %v481_v1  ;;  %v593_v21 = vmul.f32 %v592_v3, %v1742_v19  ;;  %v1016_v22 = vmax.f32 %v1745_v23, 0.0 }
 0x28a   : > { %1373 = vpow2.f32 %v857_v26  ;;  %v1018_v33 = vsub.f32 0.0, %v1017_v27  ;;  %v565_v34 = vmul.f32 1.442695, %v564_v30  ;;  %v581_v26 = vmul.f32 %v580_v2, %v1742_v19 }
 0x28b   : > { %559 = vst [vmem:[%s1730_s21 + $0x8] sm:$0xff] %v1760_v32  ;;  %v693_v35 = vand.u32 2147483647, %v1760_v32  ;;  %v1766_v37 = vmul.f32 %v785_v29, %v1760_v32  ;;  %v692_v23 = vmax.f32 %v1760_v32, 0.0 }
 0x28c   : > { %v1019_v36 = vmul.f32 1.442695, %v1018_v33  ;;  %1375 = vpow2.f32 %v565_v34 }
 0x28d   : > { %v694_v38 = vsub.f32 0.0, %v693_v35  ;;  %v586_v35 = vpop.permute.xlu1 %585 }
 0x28e   : > { %1377 = vpow2.f32 %v1019_v36 }
 0x28f   : > { %v695_v39 = vmul.f32 1.442695, %v694_v38 }
 0x291   : > { %1379 = vpow2.f32 %v695_v39 }
 0x297   : > { %v1374_v40 = vpop.eup %1373 }
 0x298   : > { %v859_v41 = vadd.f32 1.0, %v1374_v40  ;;  %v862_v48 = vmul.f32 -0.5, %v1374_v40  ;;  %v865_v52 = vand.u32 2147483647, %v1374_v40 }
 0x299   : > { %v1376_v42 = vpop.eup %1375 }
 0x29a   : > { %1381 = vlog2.f32 %v859_v41  ;;  %v567_v44 = vadd.f32 1.0, %v1376_v42  ;;  %v570_v49 = vmul.f32 -0.5, %v1376_v42  ;;  %v863_v50 = vadd.f32 1.0, %v862_v48 }
 0x29b   : > { %v1378_v43 = vpop.eup %1377  ;;  %v573_v59 = vand.u32 2147483647, %v1376_v42  ;;  %vm866_vm3 = vcmp.lt.f32.partialorder %v865_v52, 0.0004427343 }
 0x29c   : > { %v1021_v45 = vadd.f32 1.0, %v1378_v43  ;;  %1383 = vlog2.f32 %v567_v44  ;;  %v1024_v51 = vmul.f32 -0.5, %v1378_v43  ;;  %v571_v56 = vadd.f32 1.0, %v570_v49 }
 0x29d   : > { %v864_v58 = vmul.f32 %v1374_v40, %v863_v50  ;;  %v1027_v62 = vand.u32 2147483647, %v1378_v43  ;;  %vm574_vm4 = vcmp.lt.f32.partialorder %v573_v59, 0.0004427343 }
 0x29e   : > { %v1380_v46 = vpop.eup %1379  ;;  %1385 = vlog2.f32 %v1021_v45  ;;  %v1025_v60 = vadd.f32 1.0, %v1024_v51  ;;  %v572_v8 = vmul.f32 %v1376_v42, %v571_v56 }
 0x29f   : > { %v697_v47 = vadd.f32 1.0, %v1380_v46  ;;  %v700_v9 = vmul.f32 -0.5, %v1380_v46  ;;  %vm1028_vm5 = vcmp.lt.f32.partialorder %v1027_v62, 0.0004427343  ;;  %v703_v30 = vand.u32 2147483647, %v1380_v46 }
 0x2a0   : > { %v1026_v13 = vmul.f32 %v1378_v43, %v1025_v60 }
 0x2a1   : > { %1387 = vlog2.f32 %v697_v47  ;;  %v701_v25 = vadd.f32 1.0, %v700_v9  ;;  %vm704_vm6 = vcmp.lt.f32.partialorder %v703_v30, 0.0004427343 }
 0x2a3   : > { %v702_v36 = vmul.f32 %v1380_v46, %v701_v25 }
 0x2a7   : > { %v1382_v55 = vpop.eup %1381 }
 0x2a8   : > { %v861_v57 = vmul.f32 0.6931472, %v1382_v55 }
 0x2a9   : > { %v1384_v63 = vpop.eup %1383 }
 0x2aa   : > { %v867_v1 = vsel %vm866_vm3, %v864_v58, %v861_v57  ;;  %v569_v7 = vmul.f32 0.6931472, %v1384_v63 }
 0x2ab   : > { %v1386_v4 = vpop.eup %1385  ;;  %v1773_v6 = vadd.f32 %v867_v1, %v854_v61 }
 0x2ac   : > { %v1023_v12 = vmul.f32 0.6931472, %v1386_v4  ;;  %v575_v17 = vsel %vm574_vm4, %v572_v8, %v569_v7 }
 0x2ad   : > { %v874_v11 = vsub.f32 %v1736_v15, %v1773_v6  ;;  %v949_v14 = vsub.f32 %v1739_v16, %v1773_v6  ;;  %v576_v20 = vadd.f32 %v575_v17, %v562_v10 }
 0x2ae   : > { %v1388_v18 = vpop.eup %1387  ;;  %v1029_v24 = vsel %vm1028_vm5, %v1026_v13, %v1023_v12 }
 0x2af   : > { %v594_v27 = vsub.f32 %v593_v21, %v576_v20  ;;  %v1783_v29 = vadd.f32 %v1029_v24, %v1016_v22  ;;  %v699_v33 = vmul.f32 0.6931472, %v1388_v18  ;;  %v582_v34 = vsub.f32 %v581_v26, %v576_v20 }
 0x2b1   : > { %v595_v38 = vadd.f32 %v594_v27, %v586_v35  ;;  %v1036_v39 = vsub.f32 %v1754_v28, %v1783_v29  ;;  %v1789_v40 = vsub.f32 %v1758_v31, %v1783_v29  ;;  %v705_v19 = vsel %vm704_vm6, %v702_v36, %v699_v33 }
 0x2b2   : > { %v588_v41 = vadd.f32 %v586_v35, %v582_v34  ;;  %v1792_v50 = vadd.f32 %v705_v19, %v692_v23  ;;  %v709_v23 = vsub.s32 2, %v1718_v0 }
 0x2b3   : > { %v597_v42 = vrot.slane %v595_v38, 4  ;;  %v600_v43 = vrot.slane %v595_v38, 5  ;;  %v623_v44 = vrot.slane %v595_v38, 6  ;;  %v646_v45 = vrot.slane %v595_v38, 2 }
 0x2b4   : > { %v649_v47 = vrot.slane %v595_v38, 3  ;;  %v787_v59 = vsub.f32 %v1766_v37, %v1792_v50 }
 0x2b5   : > { %v599_v48 = vadd.f32 %v597_v42, %v588_v41  ;;  %v602_v46 = vadd.f32 %v600_v43, %v588_v41  ;;  %v625_v49 = vadd.f32 %v623_v44, %v588_v41  ;;  %v648_v54 = vadd.f32 %v646_v45, %v588_v41 }
 0x2b6   : > { %v651_v51 = vadd.f32 %v649_v47, %v588_v41 }
 0x2b7   : > { %v604_v52 = vrot.slane %v602_v46, 1  ;;  %v627_v53 = vrot.slane %v625_v49, 1  ;;  %v673_v31 = vrot.slane %v599_v48, 1 }
 0x2b8   : > { %v653_v55 = vrot.slane %v651_v51, 1 }
 0x2b9   : > { %v1794_v56 = vmax.f32 %v599_v48, %v604_v52  ;;  %v1796_v57 = vmax.f32 %v602_v46, %v627_v53  ;;  %v1798_v58 = vmax.f32 %v651_v51, %v673_v31  ;;  %v1816_v52 = vpop.permute.xlu1 %715 }
 0x2ba   : > { %v1802_v60 = vmax.f32 %v648_v54, %v653_v55 }
 0x2bb   : > { %v607_v61 = vsub.f32 %v599_v48, %v1794_v56  ;;  %v611_v62 = vrot.slane %v1794_v56, 7  ;;  %v630_v63 = vsub.f32 %v602_v46, %v1796_v57  ;;  %v634_v1 = vrot.slane %v1796_v57, 7 }
 0x2bc   : > { %v660_v2 = vrot.slane %v1802_v60, 7  ;;  %v680_v3 = vrot.slane %v1798_v58, 7  ;;  %v656_v9 = vsub.f32 %v648_v54, %v1802_v60  ;;  %v676_v21 = vsub.f32 %v651_v51, %v1798_v58 }
 0x2bd   : > { %v608_v4 = vmul.f32 1.442695, %v607_v61  ;;  %v613_v7 = vsub.f32 %v602_v46, %v611_v62  ;;  %v636_v8 = vsub.f32 %v625_v49, %v634_v1  ;;  %v631_v17 = vmul.f32 1.442695, %v630_v63 }
 0x2be   : > { %v662_v10 = vsub.f32 %v651_v51, %v660_v2  ;;  %v682_v12 = vsub.f32 %v599_v48, %v680_v3  ;;  %v657_v22 = vmul.f32 1.442695, %v656_v9  ;;  %v677_v25 = vmul.f32 1.442695, %v676_v21 }
 0x2bf   : > { %v614_v13 = vmul.f32 1.442695, %v613_v7  ;;  %v637_v18 = vmul.f32 1.442695, %v636_v8  ;;  %1389 = vpow2.f32 %v608_v4  ;;  %v710_v48 = vrot.slane %v1655_v5, %v709_v23 }
 0x2c0   : > { %v663_v20 = vmul.f32 1.442695, %v662_v10  ;;  %v683_v24 = vmul.f32 1.442695, %v682_v12 }
 0x2c1   : > { %1391 = vpow2.f32 %v614_v13  ;;  %v711_v49 = vmul.f32 %v710_v48, %v1760_v32 }
 0x2c2   : > { %1393 = vpow2.f32 %v637_v18 }
 0x2c3   : > { %1395 = vpow2.f32 %v631_v17  ;;  %v712_v51 = vsub.f32 %v711_v49, %v1792_v50 }
 0x2c4   : > { %1397 = vpow2.f32 %v663_v20 }
 0x2c5   : > { %1399 = vpow2.f32 %v657_v22  ;;  %v718_v0 = vadd.f32 %v1816_v52, %v712_v51 }
 0x2c6   : > { %1401 = vpow2.f32 %v683_v24 }
 0x2c7   : > { %1403 = vpow2.f32 %v677_v25  ;;  %v735_v63 = vrot.slane %v718_v0, 1  ;;  %v721_v2 = vrot.slane %v718_v0, 2  ;;  %v738_v3 = vrot.slane %v718_v0, 3 }
 0x2c8   : > { %v752_v13 = vrot.slane %v718_v0, 6  ;;  %v767_v17 = vrot.slane %v718_v0, 7 }
 0x2cc   : > { %v1390_v26 = vpop.eup %1389 }
 0x2ce   : > { %v1392_v27 = vpop.eup %1391 }
 0x2cf   : > { %v1394_v30 = vpop.eup %1393  ;;  %v617_v33 = vrot.slane %v1392_v27, 1 }
 0x2d0   : > { %v1396_v34 = vpop.eup %1395  ;;  %v640_v35 = vrot.slane %v1394_v30, 1 }
 0x2d1   : > { %v1398_v36 = vpop.eup %1397  ;;  %v619_v38 = vadd.f32 %v1390_v26, %v617_v33 }
 0x2d2   : > { %v1400_v19 = vpop.eup %1399  ;;  %v642_v41 = vadd.f32 %v1396_v34, %v640_v35  ;;  %v666_v42 = vrot.slane %v1398_v36, 1 }
 0x2d3   : > { %v1402_v43 = vpop.eup %1401  ;;  %1405 = vlog2.f32 %v619_v38 }
 0x2d4   : > { %1407 = vlog2.f32 %v642_v41  ;;  %v668_v44 = vadd.f32 %v1400_v19, %v666_v42  ;;  %v686_v45 = vrot.slane %v1402_v43, 1  ;;  %v1404_v47 = vpop.eup %1403 }
 0x2d6   : > { %1409 = vlog2.f32 %v668_v44  ;;  %v688_v46 = vadd.f32 %v1404_v47, %v686_v45 }
 0x2d8   : > { %1411 = vlog2.f32 %v688_v46 }
 0x2e0   : > { %v1406_v53 = vpop.eup %1405 }
 0x2e1   : > { %v1408_v31 = vpop.eup %1407  ;;  %v621_v54 = vmul.f32 0.6931472, %v1406_v53 }
 0x2e2   : > { %v644_v55 = vmul.f32 0.6931472, %v1408_v31 }
 0x2e3   : > { %v1410_v61 = vpop.eup %1409  ;;  %v622_v62 = vadd.f32 %v621_v54, %v1794_v56 }
 0x2e4   : > { %v645_v5 = vadd.f32 %v644_v55, %v1796_v57  ;;  %v670_v1 = vmul.f32 0.6931472, %v1410_v61 }
 0x2e5   : > { %v1412_v32 = vpop.eup %1411  ;;  %v719_v4 = vadd.f32 %v718_v0, %v622_v62  ;;  %v737_v7 = vadd.f32 %v735_v63, %v622_v62 }
 0x2e6   : > { %v671_v8 = vadd.f32 %v670_v1, %v1802_v60  ;;  %v690_v9 = vmul.f32 0.6931472, %v1412_v32  ;;  %v723_v10 = vadd.f32 %v721_v2, %v645_v5  ;;  %v740_v12 = vadd.f32 %v738_v3, %v645_v5 }
 0x2e8   : > { %v691_v18 = vadd.f32 %v690_v9, %v1798_v58  ;;  %v724_v20 = vmax.f32 %v719_v4, %v723_v10  ;;  %v741_v56 = vmax.f32 %v737_v7, %v740_v12  ;;  %v754_v21 = vadd.f32 %v752_v13, %v671_v8 }
 0x2e9   : > { %v769_v22 = vadd.f32 %v767_v17, %v671_v8 }
 0x2ea   : > { %v725_v57 = vsub.f32 %v719_v4, %v724_v20  ;;  %v728_v24 = vsub.f32 %v723_v10, %v724_v20  ;;  %v742_v25 = vsub.f32 %v737_v7, %v741_v56  ;;  %v745_v26 = vsub.f32 %v740_v12, %v741_v56 }
 0x2eb   : > { %v755_v27 = vadd.f32 %v718_v0, %v691_v18  ;;  %v770_v30 = vadd.f32 %v735_v63, %v691_v18  ;;  %v788_v63 = vadd.f32 %v787_v59, %v1816_v52 }
 0x2ec   : > { %v726_v33 = vmul.f32 1.442695, %v725_v57  ;;  %v729_v34 = vmul.f32 1.442695, %v728_v24  ;;  %v743_v60 = vmul.f32 1.442695, %v742_v25 }
 0x2ed   : > { %v746_v35 = vmul.f32 1.442695, %v745_v26  ;;  %v756_v36 = vmax.f32 %v754_v21, %v755_v27  ;;  %v771_v38 = vmax.f32 %v769_v22, %v770_v30  ;;  %v790_v4 = vrot.slane %v788_v63, 4 }
 0x2ee   : > { %1413 = vpow2.f32 %v726_v33  ;;  %v807_v7 = vrot.slane %v788_v63, 5  ;;  %v793_v8 = vrot.slane %v788_v63, 6  ;;  %v810_v17 = vrot.slane %v788_v63, 7 }
 0x2ef   : > { %1415 = vpow2.f32 %v729_v34  ;;  %v757_v23 = vsub.f32 %v754_v21, %v756_v36  ;;  %v760_v58 = vsub.f32 %v755_v27, %v756_v36  ;;  %v772_v19 = vsub.f32 %v769_v22, %v771_v38 }
 0x2f0   : > { %1417 = vpow2.f32 %v743_v60  ;;  %v775_v41 = vsub.f32 %v770_v30, %v771_v38  ;;  %v824_v50 = vrot.slane %v788_v63, 2  ;;  %v839_v59 = vrot.slane %v788_v63, 3 }
 0x2f1   : > { %1419 = vpow2.f32 %v746_v35  ;;  %v758_v42 = vmul.f32 1.442695, %v757_v23  ;;  %v761_v43 = vmul.f32 1.442695, %v760_v58  ;;  %v773_v44 = vmul.f32 1.442695, %v772_v19 }
 0x2f2   : > { %v776_v45 = vmul.f32 1.442695, %v775_v41 }
 0x2f3   : > { %1421 = vpow2.f32 %v758_v42 }
 0x2f4   : > { %1423 = vpow2.f32 %v761_v43 }
 0x2f5   : > { %1425 = vpow2.f32 %v773_v44 }
 0x2f6   : > { %1427 = vpow2.f32 %v776_v45 }
 0x2fb   : > { %v1414_v47 = vpop.eup %1413 }
 0x2fc   : > { %v1416_v48 = vpop.eup %1415 }
 0x2fd   : > { %v1418_v46 = vpop.eup %1417  ;;  %v731_v49 = vadd.f32 %v1416_v48, %v1414_v47 }
 0x2fe   : > { %v1420_v51 = vpop.eup %1419 }
 0x2ff   : > { %1429 = vlog2.f32 %v731_v49  ;;  %v748_v0 = vadd.f32 %v1420_v51, %v1418_v46 }
 0x300   : > { %v1422_v53 = vpop.eup %1421 }
 0x301   : > { %v1424_v31 = vpop.eup %1423  ;;  %1431 = vlog2.f32 %v748_v0 }
 0x302   : > { %v1426_v54 = vpop.eup %1425  ;;  %v763_v55 = vadd.f32 %v1424_v31, %v1422_v53 }
 0x303   : > { %v1428_v61 = vpop.eup %1427 }
 0x304   : > { %1433 = vlog2.f32 %v763_v55  ;;  %v778_v62 = vadd.f32 %v1428_v61, %v1426_v54 }
 0x306   : > { %1435 = vlog2.f32 %v778_v62 }
 0x30c   : > { %v1430_v5 = vpop.eup %1429 }
 0x30d   : > { %v733_v1 = vmul.f32 0.6931472, %v1430_v5 }
 0x30e   : > { %v1432_v2 = vpop.eup %1431 }
 0x30f   : > { %v734_v3 = vadd.f32 %v733_v1, %v724_v20  ;;  %v750_v32 = vmul.f32 0.6931472, %v1432_v2 }
 0x311   : > { %v1434_v9 = vpop.eup %1433  ;;  %v751_v10 = vadd.f32 %v750_v32, %v741_v56  ;;  %v792_v12 = vadd.f32 %v790_v4, %v734_v3  ;;  %v809_v13 = vadd.f32 %v807_v7, %v734_v3  ;;  %v1827_v3 = vpop.permute.xlu1 %877 }
 0x312   : > { %v765_v18 = vmul.f32 0.6931472, %v1434_v9  ;;  %v880_v32 = vadd.f32 %v1827_v3, %v874_v11 }
 0x313   : > { %v1436_v21 = vpop.eup %1435  ;;  %v795_v22 = vadd.f32 %v793_v8, %v751_v10  ;;  %v812_v57 = vadd.f32 %v810_v17, %v751_v10 }
 0x314   : > { %v766_v24 = vadd.f32 %v765_v18, %v756_v36  ;;  %v780_v37 = vmul.f32 0.6931472, %v1436_v21  ;;  %v897_v9 = vrot.slane %v880_v32, 1  ;;  %v900_v18 = vrot.slane %v880_v32, 3 }
 0x315   : > { %v796_v52 = vmax.f32 %v792_v12, %v795_v22  ;;  %v813_v25 = vmax.f32 %v809_v13, %v812_v57  ;;  %v929_v15 = vrot.slane %v880_v32, 7 }
 0x316   : > { %v781_v20 = vadd.f32 %v780_v37, %v771_v38  ;;  %v826_v26 = vadd.f32 %v824_v50, %v766_v24  ;;  %v841_v27 = vadd.f32 %v839_v59, %v766_v24 }
 0x317   : > { %v797_v30 = vsub.f32 %v792_v12, %v796_v52  ;;  %v800_v33 = vsub.f32 %v795_v22, %v796_v52  ;;  %v814_v34 = vsub.f32 %v809_v13, %v813_v25  ;;  %v817_v56 = vsub.f32 %v812_v57, %v813_v25 }
 0x318   : > { %v827_v60 = vadd.f32 %v790_v4, %v781_v20  ;;  %v842_v35 = vadd.f32 %v807_v7, %v781_v20  ;;  %v883_v13 = vrot.slane %v880_v32, 2  ;;  %v914_v20 = vrot.slane %v880_v32, 6 }
 0x319   : > { %v798_v23 = vmul.f32 1.442695, %v797_v30  ;;  %v801_v58 = vmul.f32 1.442695, %v800_v33  ;;  %v815_v19 = vmul.f32 1.442695, %v814_v34 }
 0x31a   : > { %v818_v41 = vmul.f32 1.442695, %v817_v56  ;;  %v828_v42 = vmax.f32 %v826_v26, %v827_v60  ;;  %v843_v36 = vmax.f32 %v841_v27, %v842_v35 }
 0x31b   : > { %1437 = vpow2.f32 %v798_v23 }
 0x31c   : > { %1439 = vpow2.f32 %v801_v58  ;;  %v829_v43 = vsub.f32 %v826_v26, %v828_v42  ;;  %v832_v44 = vsub.f32 %v827_v60, %v828_v42  ;;  %v844_v45 = vsub.f32 %v841_v27, %v843_v36 }
 0x31d   : > { %1441 = vpow2.f32 %v815_v19  ;;  %v847_v38 = vsub.f32 %v842_v35, %v843_v36 }
 0x31e   : > { %1443 = vpow2.f32 %v818_v41  ;;  %v830_v47 = vmul.f32 1.442695, %v829_v43  ;;  %v833_v48 = vmul.f32 1.442695, %v832_v44  ;;  %v845_v46 = vmul.f32 1.442695, %v844_v45 }
 0x31f   : > { %v848_v49 = vmul.f32 1.442695, %v847_v38 }
 0x320   : > { %1445 = vpow2.f32 %v830_v47 }
 0x321   : > { %1447 = vpow2.f32 %v833_v48 }
 0x322   : > { %1449 = vpow2.f32 %v845_v46 }
 0x323   : > { %1451 = vpow2.f32 %v848_v49 }
 0x328   : > { %v1438_v51 = vpop.eup %1437 }
 0x329   : > { %v1440_v0 = vpop.eup %1439 }
 0x32a   : > { %v1442_v53 = vpop.eup %1441  ;;  %v803_v31 = vadd.f32 %v1440_v0, %v1438_v51 }
 0x32b   : > { %v1444_v54 = vpop.eup %1443 }
 0x32c   : > { %1453 = vlog2.f32 %v803_v31  ;;  %v820_v55 = vadd.f32 %v1444_v54, %v1442_v53 }
 0x32d   : > { %v1446_v61 = vpop.eup %1445 }
 0x32e   : > { %v1448_v62 = vpop.eup %1447  ;;  %1455 = vlog2.f32 %v820_v55 }
 0x32f   : > { %v1450_v63 = vpop.eup %1449  ;;  %v835_v5 = vadd.f32 %v1448_v62, %v1446_v61 }
 0x330   : > { %v1452_v1 = vpop.eup %1451 }
 0x331   : > { %1457 = vlog2.f32 %v835_v5  ;;  %v850_v2 = vadd.f32 %v1452_v1, %v1450_v63 }
 0x333   : > { %1459 = vlog2.f32 %v850_v2 }
 0x339   : > { %v1454_v4 = vpop.eup %1453 }
 0x33a   : > { %v805_v7 = vmul.f32 0.6931472, %v1454_v4 }
 0x33b   : > { %v1456_v8 = vpop.eup %1455 }
 0x33c   : > { %v806_v10 = vadd.f32 %v805_v7, %v796_v52  ;;  %v822_v12 = vmul.f32 0.6931472, %v1456_v8  ;;  %v950_v7 = vadd.f32 %v949_v14, %v1827_v3 }
 0x33e   : > { %v1458_v17 = vpop.eup %1457  ;;  %v823_v21 = vadd.f32 %v822_v12, %v813_v25  ;;  %v881_v22 = vadd.f32 %v880_v32, %v806_v10  ;;  %v899_v57 = vadd.f32 %v897_v9, %v806_v10  ;;  %v952_v12 = vrot.slane %v950_v7, 4 }
 0x33f   : > { %v837_v24 = vmul.f32 0.6931472, %v1458_v17  ;;  %v1001_v16 = vrot.slane %v950_v7, 3 }
 0x340   : > { %v1460_v37 = vpop.eup %1459  ;;  %v885_v50 = vadd.f32 %v883_v13, %v823_v21  ;;  %v902_v59 = vadd.f32 %v900_v18, %v823_v21  ;;  %v969_v13 = vrot.slane %v950_v7, 5  ;;  %v955_v21 = vrot.slane %v950_v7, 6 }
 0x341   : > { %v838_v26 = vadd.f32 %v837_v24, %v828_v42  ;;  %v852_v11 = vmul.f32 0.6931472, %v1460_v37 }
 0x342   : > { %v886_v27 = vmax.f32 %v881_v22, %v885_v50  ;;  %v903_v30 = vmax.f32 %v899_v57, %v902_v59 }
 0x343   : > { %v853_v33 = vadd.f32 %v852_v11, %v843_v36  ;;  %v916_v34 = vadd.f32 %v914_v20, %v838_v26  ;;  %v931_v52 = vadd.f32 %v929_v15, %v838_v26  ;;  %v986_v11 = vrot.slane %v950_v7, 2 }
 0x344   : > { %v887_v56 = vsub.f32 %v881_v22, %v886_v27  ;;  %v890_v60 = vsub.f32 %v885_v50, %v886_v27  ;;  %v904_v35 = vsub.f32 %v899_v57, %v903_v30  ;;  %v907_v23 = vsub.f32 %v902_v59, %v903_v30 }
 0x345   : > { %v917_v25 = vadd.f32 %v880_v32, %v853_v33  ;;  %v932_v58 = vadd.f32 %v897_v9, %v853_v33  ;;  %v972_v57 = vrot.slane %v950_v7, 7 }
 0x346   : > { %v888_v19 = vmul.f32 1.442695, %v887_v56  ;;  %v891_v41 = vmul.f32 1.442695, %v890_v60  ;;  %v905_v43 = vmul.f32 1.442695, %v904_v35 }
 0x347   : > { %v908_v44 = vmul.f32 1.442695, %v907_v23  ;;  %v918_v45 = vmax.f32 %v916_v34, %v917_v25  ;;  %v933_v38 = vmax.f32 %v931_v52, %v932_v58 }
 0x348   : > { %1461 = vpow2.f32 %v888_v19 }
 0x349   : > { %1463 = vpow2.f32 %v891_v41  ;;  %v919_v42 = vsub.f32 %v916_v34, %v918_v45  ;;  %v922_v47 = vsub.f32 %v917_v25, %v918_v45  ;;  %v934_v48 = vsub.f32 %v931_v52, %v933_v38 }
 0x34a   : > { %1465 = vpow2.f32 %v905_v43  ;;  %v937_v36 = vsub.f32 %v932_v58, %v933_v38 }
 0x34b   : > { %1467 = vpow2.f32 %v908_v44  ;;  %v920_v46 = vmul.f32 1.442695, %v919_v42  ;;  %v923_v49 = vmul.f32 1.442695, %v922_v47  ;;  %v935_v51 = vmul.f32 1.442695, %v934_v48 }
 0x34c   : > { %v938_v0 = vmul.f32 1.442695, %v937_v36 }
 0x34d   : > { %1469 = vpow2.f32 %v920_v46 }
 0x34e   : > { %1471 = vpow2.f32 %v923_v49 }
 0x34f   : > { %1473 = vpow2.f32 %v935_v51 }
 0x350   : > { %1475 = vpow2.f32 %v938_v0 }
 0x355   : > { %v1462_v53 = vpop.eup %1461 }
 0x356   : > { %v1464_v31 = vpop.eup %1463 }
 0x357   : > { %v1466_v54 = vpop.eup %1465  ;;  %v893_v55 = vadd.f32 %v1464_v31, %v1462_v53 }
 0x358   : > { %v1468_v61 = vpop.eup %1467 }
 0x359   : > { %1477 = vlog2.f32 %v893_v55  ;;  %v910_v62 = vadd.f32 %v1468_v61, %v1466_v54 }
 0x35a   : > { %v1470_v63 = vpop.eup %1469 }
 0x35b   : > { %v1472_v5 = vpop.eup %1471  ;;  %1479 = vlog2.f32 %v910_v62 }
 0x35c   : > { %v1474_v1 = vpop.eup %1473  ;;  %v925_v2 = vadd.f32 %v1472_v5, %v1470_v63 }
 0x35d   : > { %v1476_v32 = vpop.eup %1475 }
 0x35e   : > { %1481 = vlog2.f32 %v925_v2  ;;  %v940_v4 = vadd.f32 %v1476_v32, %v1474_v1 }
 0x360   : > { %1483 = vlog2.f32 %v940_v4  ;;  %v1040_v4 = vpop.permute.xlu1 %1039 }
 0x361   : > { %v1042_v7 = vadd.f32 %v1040_v4, %v1036_v39 }
 0x366   : > { %v1478_v8 = vpop.eup %1477 }
 0x367   : > { %v895_v9 = vmul.f32 0.6931472, %v1478_v8 }
 0x368   : > { %v1480_v10 = vpop.eup %1479 }
 0x369   : > { %v896_v17 = vadd.f32 %v895_v9, %v886_v27  ;;  %v912_v18 = vmul.f32 0.6931472, %v1480_v10 }
 0x36b   : > { %v1482_v22 = vpop.eup %1481  ;;  %v913_v24 = vadd.f32 %v912_v18, %v903_v30  ;;  %v954_v37 = vadd.f32 %v952_v12, %v896_v17  ;;  %v971_v50 = vadd.f32 %v969_v13, %v896_v17  ;;  %v1045_v18 = vrot.slane %v1042_v7, 2 }
 0x36c   : > { %v927_v59 = vmul.f32 0.6931472, %v1482_v22  ;;  %v1062_v22 = vrot.slane %v1042_v7, 3 }
 0x36d   : > { %v1484_v20 = vpop.eup %1483  ;;  %v957_v15 = vadd.f32 %v955_v21, %v913_v24  ;;  %v974_v26 = vadd.f32 %v972_v57, %v913_v24 }
 0x36e   : > { %v928_v6 = vadd.f32 %v927_v59, %v918_v45  ;;  %v942_v14 = vmul.f32 0.6931472, %v1484_v20 }
 0x36f   : > { %v958_v3 = vmax.f32 %v954_v37, %v957_v15  ;;  %v975_v33 = vmax.f32 %v971_v50, %v974_v26 }
 0x370   : > { %v943_v34 = vadd.f32 %v942_v14, %v933_v38  ;;  %v988_v52 = vadd.f32 %v986_v11, %v928_v6  ;;  %v1003_v27 = vadd.f32 %v1001_v16, %v928_v6  ;;  %v1091_v11 = vrot.slane %v1042_v7, 7 }
 0x371   : > { %v959_v56 = vsub.f32 %v954_v37, %v958_v3  ;;  %v962_v60 = vsub.f32 %v957_v15, %v958_v3  ;;  %v976_v35 = vsub.f32 %v971_v50, %v975_v33  ;;  %v979_v23 = vsub.f32 %v974_v26, %v975_v33 }
 0x372   : > { %v989_v30 = vadd.f32 %v952_v12, %v943_v34  ;;  %v1004_v25 = vadd.f32 %v969_v13, %v943_v34  ;;  %v1059_v12 = vrot.slane %v1042_v7, 1  ;;  %v1076_v26 = vrot.slane %v1042_v7, 6 }
 0x373   : > { %v960_v58 = vmul.f32 1.442695, %v959_v56  ;;  %v963_v19 = vmul.f32 1.442695, %v962_v60  ;;  %v977_v41 = vmul.f32 1.442695, %v976_v35 }
 0x374   : > { %v980_v43 = vmul.f32 1.442695, %v979_v23  ;;  %v990_v44 = vmax.f32 %v988_v52, %v989_v30  ;;  %v1005_v42 = vmax.f32 %v1003_v27, %v1004_v25 }
 0x375   : > { %1485 = vpow2.f32 %v960_v58 }
 0x376   : > { %1487 = vpow2.f32 %v963_v19  ;;  %v991_v45 = vsub.f32 %v988_v52, %v990_v44  ;;  %v994_v47 = vsub.f32 %v989_v30, %v990_v44  ;;  %v1006_v48 = vsub.f32 %v1003_v27, %v1005_v42 }
 0x377   : > { %1489 = vpow2.f32 %v977_v41  ;;  %v1009_v38 = vsub.f32 %v1004_v25, %v1005_v42 }
 0x378   : > { %1491 = vpow2.f32 %v980_v43  ;;  %v992_v36 = vmul.f32 1.442695, %v991_v45  ;;  %v995_v46 = vmul.f32 1.442695, %v994_v47  ;;  %v1007_v49 = vmul.f32 1.442695, %v1006_v48 }
 0x379   : > { %v1010_v51 = vmul.f32 1.442695, %v1009_v38 }
 0x37a   : > { %1493 = vpow2.f32 %v992_v36 }
 0x37b   : > { %1495 = vpow2.f32 %v995_v46 }
 0x37c   : > { %1497 = vpow2.f32 %v1007_v49 }
 0x37d   : > { %1499 = vpow2.f32 %v1010_v51 }
 0x382   : > { %v1486_v0 = vpop.eup %1485 }
 0x383   : > { %v1488_v53 = vpop.eup %1487 }
 0x384   : > { %v1490_v31 = vpop.eup %1489  ;;  %v965_v54 = vadd.f32 %v1488_v53, %v1486_v0 }
 0x385   : > { %v1492_v55 = vpop.eup %1491 }
 0x386   : > { %1501 = vlog2.f32 %v965_v54  ;;  %v982_v61 = vadd.f32 %v1492_v55, %v1490_v31 }
 0x387   : > { %v1494_v62 = vpop.eup %1493 }
 0x388   : > { %v1496_v63 = vpop.eup %1495  ;;  %1503 = vlog2.f32 %v982_v61 }
 0x389   : > { %v1498_v5 = vpop.eup %1497  ;;  %v997_v1 = vadd.f32 %v1496_v63, %v1494_v62 }
 0x38a   : > { %v1500_v2 = vpop.eup %1499 }
 0x38b   : > { %1505 = vlog2.f32 %v997_v1  ;;  %v1012_v32 = vadd.f32 %v1500_v2, %v1498_v5 }
 0x38d   : > { %1507 = vlog2.f32 %v1012_v32  ;;  %v1113_v32 = vrot.slane %v1789_v40, 4 }
 0x393   : > { %v1502_v8 = vpop.eup %1501 }
 0x394   : > { %v967_v9 = vmul.f32 0.6931472, %v1502_v8 }
 0x395   : > { %v1504_v10 = vpop.eup %1503 }
 0x396   : > { %v968_v13 = vadd.f32 %v967_v9, %v958_v3  ;;  %v984_v17 = vmul.f32 0.6931472, %v1504_v10  ;;  %v1116_v9 = vrot.slane %v1789_v40, 6 }
 0x398   : > { %v1506_v21 = vpop.eup %1505  ;;  %v985_v57 = vadd.f32 %v984_v17, %v975_v33  ;;  %v1043_v24 = vadd.f32 %v1042_v7, %v968_v13  ;;  %v1061_v37 = vadd.f32 %v1059_v12, %v968_v13 }
 0x399   : > { %v999_v50 = vmul.f32 0.6931472, %v1506_v21  ;;  %v1131_v21 = vrot.slane %v1789_v40, 2 }
 0x39a   : > { %v1508_v59 = vpop.eup %1507  ;;  %v1047_v20 = vadd.f32 %v1045_v18, %v985_v57  ;;  %v1064_v15 = vadd.f32 %v1062_v22, %v985_v57 }
 0x39b   : > { %v1000_v28 = vadd.f32 %v999_v50, %v990_v44  ;;  %v1014_v29 = vmul.f32 0.6931472, %v1508_v59 }
 0x39c   : > { %v1048_v39 = vmax.f32 %v1043_v24, %v1047_v20  ;;  %v1065_v16 = vmax.f32 %v1061_v37, %v1064_v15 }
 0x39d   : > { %v1015_v6 = vadd.f32 %v1014_v29, %v1005_v42  ;;  %v1078_v14 = vadd.f32 %v1076_v26, %v1000_v28  ;;  %v1093_v3 = vadd.f32 %v1091_v11, %v1000_v28 }
 0x39e   : > { %v1049_v34 = vsub.f32 %v1043_v24, %v1048_v39  ;;  %v1052_v52 = vsub.f32 %v1047_v20, %v1048_v39  ;;  %v1066_v27 = vsub.f32 %v1061_v37, %v1065_v16  ;;  %v1069_v56 = vsub.f32 %v1064_v15, %v1065_v16 }
 0x39f   : > { %v1079_v33 = vadd.f32 %v1042_v7, %v1015_v6  ;;  %v1094_v60 = vadd.f32 %v1059_v12, %v1015_v6 }
 0x3a0   : > { %v1050_v35 = vmul.f32 1.442695, %v1049_v34  ;;  %v1053_v23 = vmul.f32 1.442695, %v1052_v52  ;;  %v1067_v30 = vmul.f32 1.442695, %v1066_v27 }
 0x3a1   : > { %v1070_v25 = vmul.f32 1.442695, %v1069_v56  ;;  %v1080_v58 = vmax.f32 %v1078_v14, %v1079_v33  ;;  %v1095_v19 = vmax.f32 %v1093_v3, %v1094_v60 }
 0x3a2   : > { %1509 = vpow2.f32 %v1050_v35 }
 0x3a3   : > { %1511 = vpow2.f32 %v1053_v23  ;;  %v1081_v41 = vsub.f32 %v1078_v14, %v1080_v58  ;;  %v1084_v43 = vsub.f32 %v1079_v33, %v1080_v58  ;;  %v1096_v44 = vsub.f32 %v1093_v3, %v1095_v19 }
 0x3a4   : > { %1513 = vpow2.f32 %v1067_v30  ;;  %v1099_v42 = vsub.f32 %v1094_v60, %v1095_v19 }
 0x3a5   : > { %1515 = vpow2.f32 %v1070_v25  ;;  %v1082_v45 = vmul.f32 1.442695, %v1081_v41  ;;  %v1085_v47 = vmul.f32 1.442695, %v1084_v43  ;;  %v1097_v48 = vmul.f32 1.442695, %v1096_v44 }
 0x3a6   : > { %v1100_v38 = vmul.f32 1.442695, %v1099_v42  ;;  %v1194_v25 = vld [vmem:[%s1730_s21] sm:$0xff] (%p1630_p4)  ;;  %v1200_v41 = vld [vmem:[%s1730_s21 + $0x18] sm:$0xff] (%p1630_p4) }
 0x3a7   : > { %1517 = vpow2.f32 %v1082_v45  ;;  %1195 = vst [vmem:[%s1159_s12] sm:$0xff] (%p1630_p4), %v1194_v25  ;;  %1201 = vst [vmem:[%s1159_s12 + $0x30] sm:$0xff] (%p1630_p4), %v1200_v41 }
 0x3a8   : > { %1519 = vpow2.f32 %v1085_v47 }
 0x3a9   : > { %1521 = vpow2.f32 %v1097_v48 }
 0x3aa   : > { %1523 = vpow2.f32 %v1100_v38 }
 0x3af   : > { %v1510_v36 = vpop.eup %1509 }
 0x3b0   : > { %v1512_v46 = vpop.eup %1511 }
 0x3b1   : > { %v1514_v49 = vpop.eup %1513  ;;  %v1055_v51 = vadd.f32 %v1512_v46, %v1510_v36 }
 0x3b2   : > { %v1516_v0 = vpop.eup %1515 }
 0x3b3   : > { %1525 = vlog2.f32 %v1055_v51  ;;  %v1072_v53 = vadd.f32 %v1516_v0, %v1514_v49 }
 0x3b4   : > { %v1518_v31 = vpop.eup %1517 }
 0x3b5   : > { %v1520_v54 = vpop.eup %1519  ;;  %1527 = vlog2.f32 %v1072_v53 }
 0x3b6   : > { %v1522_v55 = vpop.eup %1521  ;;  %v1087_v61 = vadd.f32 %v1520_v54, %v1518_v31 }
 0x3b7   : > { %v1524_v62 = vpop.eup %1523 }
 0x3b8   : > { %1529 = vlog2.f32 %v1087_v61  ;;  %v1102_v63 = vadd.f32 %v1524_v62, %v1522_v55 }
 0x3ba   : > { %1531 = vlog2.f32 %v1102_v63 }
 0x3c0   : > { %v1526_v5 = vpop.eup %1525 }
 0x3c1   : > { %v1057_v1 = vmul.f32 0.6931472, %v1526_v5 }
 0x3c2   : > { %v1528_v2 = vpop.eup %1527 }
 0x3c3   : > { %v1058_v4 = vadd.f32 %v1057_v1, %v1048_v39  ;;  %v1074_v7 = vmul.f32 0.6931472, %v1528_v2 }
 0x3c5   : > { %v1530_v8 = vpop.eup %1529  ;;  %v1075_v10 = vadd.f32 %v1074_v7, %v1065_v16  ;;  %v1115_v12 = vadd.f32 %v1113_v32, %v1058_v4 }
 0x3c6   : > { %v1089_v13 = vmul.f32 0.6931472, %v1530_v8 }
 0x3c7   : > { %v1532_v17 = vpop.eup %1531  ;;  %v1118_v18 = vadd.f32 %v1116_v9, %v1075_v10 }
 0x3c8   : > { %v1090_v22 = vadd.f32 %v1089_v13, %v1080_v58  ;;  %v1104_v57 = vmul.f32 0.6931472, %v1532_v17  ;;  %v1196_v58 = vld [vmem:[%s1730_s21 + $0x8] sm:$0xff] (%p1630_p4) }
 0x3c9   : > { %v1119_v24 = vmax.f32 %v1115_v12, %v1118_v18  ;;  %1197 = vst [vmem:[%s1159_s12 + $0x10] sm:$0xff] (%p1630_p4), %v1196_v58 }
 0x3ca   : > { %v1105_v37 = vadd.f32 %v1104_v57, %v1095_v19  ;;  %v1133_v50 = vadd.f32 %v1131_v21, %v1090_v22  ;;  %v1198_v19 = vld [vmem:[%s1730_s21 + $0x10] sm:$0xff] (%p1630_p4) }
 0x3cb   : > { %v1120_v59 = vsub.f32 %v1115_v12, %v1119_v24  ;;  %v1123_v20 = vsub.f32 %v1118_v18, %v1119_v24  ;;  %1199 = vst [vmem:[%s1159_s12 + $0x20] sm:$0xff] (%p1630_p4), %v1198_v19 }
 0x3cc   : > { %v1134_v15 = vadd.f32 %v1113_v32, %v1105_v37 }
 0x3cd   : > { %v1121_v26 = vmul.f32 1.442695, %v1120_v59  ;;  %v1124_v11 = vmul.f32 1.442695, %v1123_v20 }
 0x3ce   : > { %v1135_v28 = vmax.f32 %v1133_v50, %v1134_v15 }
 0x3cf   : > { %1533 = vpow2.f32 %v1121_v26 }
 0x3d0   : > { %1535 = vpow2.f32 %v1124_v11  ;;  %v1136_v29 = vsub.f32 %v1133_v50, %v1135_v28  ;;  %v1139_v39 = vsub.f32 %v1134_v15, %v1135_v28 }
 0x3d2   : > { %v1137_v16 = vmul.f32 1.442695, %v1136_v29  ;;  %v1140_v6 = vmul.f32 1.442695, %v1139_v39 }
 0x3d4   : > { %1537 = vpow2.f32 %v1137_v16 }
 0x3d5   : > { %1539 = vpow2.f32 %v1140_v6 }
 0x3dc   : > { %v1534_v40 = vpop.eup %1533 }
 0x3dd   : > { %v1536_v14 = vpop.eup %1535 }
 0x3de   : > { %v1126_v3 = vadd.f32 %v1536_v14, %v1534_v40 }
 0x3e0   : > { %1541 = vlog2.f32 %v1126_v3 }
 0x3e1   : > { %v1538_v34 = vpop.eup %1537 }
 0x3e2   : > { %v1540_v52 = vpop.eup %1539 }
 0x3e3   : > { %v1142_v27 = vadd.f32 %v1540_v52, %v1538_v34 }
 0x3e5   : > { %1543 = vlog2.f32 %v1142_v27 }
 0x3ed   : > { %v1542_v56 = vpop.eup %1541 }
 0x3ee   : > { %v1128_v33 = vmul.f32 0.6931472, %v1542_v56 }
 0x3f0   : > { %v1129_v60 = vadd.f32 %v1128_v33, %v1119_v24 }
 0x3f2   : > { %v1544_v35 = vpop.eup %1543  ;;  %1130 = vst [vmem:[%s253_s9] sm:$0x1] %v1129_v60 }
 0x3f3   : > { %v1144_v23 = vmul.f32 0.6931472, %v1544_v35  ;;  %1157 = sbr.rel (!%p1630_p4) target bundleno = 1016 (0x3f8), region = 44 }
 0x3f5   : > { %v1145_v30 = vadd.f32 %v1144_v23, %v1135_v28 }
 0x3f7   : > { %1146 = vst [vmem:[%s253_s9 - $0x1] sm:$0x4] %v1145_v30 }
 0x3f8 PF: > { %p14_p8 = scmp.ge.s32.totalorder %s1620_s25, 4   ;;  %s1875_s21 = smov %s1563_s22 }
 0x3f9   : > { %s1876_s22 = smov %s1628_s28  ;;  %s1877_s23 = smov %s1620_s25 }
 0x3fa   :  { %16 = sbr.rel (!%p14_p8) target bundleno = 2 (0x2), region = 120 }

</bundles_post_ra>
